<compile_context>
chip_gen: v6e
topology: v6e:2x2x1
jax: 0.10.0
libtpu: 0.0.40
codegen_flags: <defaults>
</compile_context>

<pallas_src>
import jax
import jax.numpy as jnp
from jax.experimental import pallas as pl
from jax.experimental.pallas import tpu as pltpu


def _make_conv3x3_kernel(n_out_rows, w_pad):
    """3x3 / stride-1 / padding-1 conv as 9 shifted-slice MXU matmuls."""

    def kernel(x_ref, w_ref, o_ref):
        # x_ref: (Hp*Wp, Cin)        spatially padded, row-flattened NHWC image
        # w_ref: (9, Cin, Cout_pad)  per-tap weights, Cout zero-padded to 128
        # o_ref: (H*Wp, Cout_pad)    lane-dense output (width-pad column is junk)

        def tap_dot(kh, kw):
            off = kh * w_pad + kw                       # static slice offset
            return jnp.dot(x_ref[off:off + n_out_rows, :],
                           w_ref[kh * 3 + kw],
                           preferred_element_type=jnp.float32)

        acc = tap_dot(0, 0)
        for kh in range(3):
            for kw in range(3):
                if (kh, kw) == (0, 0):
                    continue
                acc = acc + tap_dot(kh, kw)

        o_ref[...] = acc.astype(o_ref.dtype)

    return kernel


def make_conv2d_139(w_oihw):
    """Prepare weights once (module init) and return the jitted forward."""
    Cout, Cin, KH, KW = w_oihw.shape
    assert (KH, KW) == (3, 3)
    Cout_pad = ((Cout + 127) // 128) * 128              # 48 -> 128 (lane-dense)

    # OIHW -> (kh*kw, Cin, Cout), zero-pad Cout to 128 lanes.  Done ONCE here,
    # not per call (perf review: hoist the weight transform).
    w_taps = jnp.transpose(w_oihw, (2, 3, 1, 0)).reshape(9, Cin, Cout)
    w_taps = jnp.pad(w_taps, ((0, 0), (0, 0), (0, Cout_pad - Cout)))
    w_taps = w_taps.astype(jnp.float32)

    @jax.jit
    def forward(x_nchw):
        N, Cin_x, H, W = x_nchw.shape
        assert Cin_x == Cin
        Wp, Hp = W + 1, H + 3                           # 7x7 -> 8 wide, 10 tall
        n_out_rows = H * Wp                             # 56 (multiple of 8)

        # NCHW -> NHWC, add halo: 1 top row, 2 bottom rows, 1 left column.
        # The right "pad column" is the next row's zero left column (the flat
        # slice wraps onto it); the extra bottom row keeps tap (2,2) in bounds.
        x = jnp.transpose(x_nchw, (0, 2, 3, 1))
        x = jnp.pad(x, ((0, 0), (1, 2), (1, 0), (0, 0)))
        x = x.reshape(N, Hp * Wp, Cin)

        out = pl.pallas_call(
            _make_conv3x3_kernel(n_out_rows, Wp),
            out_shape=jax.ShapeDtypeStruct((N, n_out_rows, Cout_pad),
                                           jnp.float32),
            grid=(N,),
            in_specs=[
                pl.BlockSpec((None, Hp * Wp, Cin), lambda n: (n, 0, 0)),
                # Constant index_map -> weight block stays resident across grid
                # steps.  (pipeline_mode=pl.Buffered(1) would save one ~0.9 MB
                # buffer; skipped as pure hygiene at this size.)
                pl.BlockSpec((9, Cin, Cout_pad), lambda n: (0, 0, 0)),
            ],
            out_specs=pl.BlockSpec((None, n_out_rows, Cout_pad),
                                   lambda n: (n, 0, 0)),
            compiler_params=pltpu.CompilerParams(
                dimension_semantics=("parallel",)),
        )(x, w_taps)

        # Drop the width-pad column and the Cout lane padding, back to NCHW.
        out = out.reshape(N, H, Wp, Cout_pad)[:, :, :W, :Cout]
        return jnp.transpose(out, (0, 3, 1, 2))

    return forward


if __name__ == "__main__":
    key = jax.random.PRNGKey(0)
    kx, kw = jax.random.split(key)

    # Same shapes as the PyTorch module: x494 (1, 192, 7, 7), weight (48, 192, 3, 3).
    x = jax.random.normal(kx, (1, 192, 7, 7), dtype=jnp.float32)
    fan_in = 192 * 3 * 3
    w = jax.random.normal(kw, (48, 192, 3, 3), dtype=jnp.float32) * (2.0 / fan_in) ** 0.5

    conv = make_conv2d_139(w)                 # weight transform happens once here
    out = jax.block_until_ready(conv(x))
    assert out.shape == (1, 48, 7, 7), out.shape

    # Reference check against XLA's conv.
    ref = jax.lax.conv_general_dilated(
        x, w, window_strides=(1, 1), padding=((1, 1), (1, 1)),
        dimension_numbers=('NCHW', 'OIHW', 'NCHW'))
    assert jnp.allclose(out, ref, atol=1e-4, rtol=1e-4), float(jnp.max(jnp.abs(out - ref)))

    print("KERNEL_OK")
</pallas_src>

<mosaic_0001>
module attributes {stable_mosaic.version = 11 : i64} {
  func.func @kernel(%arg0: i32, %arg1: memref<1x80x192xf32, #tpu.memory_space<vmem>>, %arg2: memref<9x192x128xf32, #tpu.memory_space<vmem>>, %arg3: memref<1x56x128xf32, #tpu.memory_space<vmem>>) attributes {dimension_semantics = [#tpu.dimension_semantics<parallel>], iteration_bounds = array<i64: 1>, scalar_prefetch = 0 : i64, scratch_operands = 0 : i64, tpu.core_type = #tpu.core_type<tc>, window_params = [{transform_indices = @transform_0, window_bounds = array<i64: 1, 80, 192>}, {pipeline_mode = #tpu.pipeline_mode<synchronous>, transform_indices = @transform_1, window_bounds = array<i64: 9, 192, 128>}, {transform_indices = @transform_2, window_bounds = array<i64: 1, 56, 128>}]} {
    %c0 = arith.constant 0 : index
    %c0_0 = arith.constant 0 : index
    %c0_1 = arith.constant 0 : index
    %0 = vector.load %arg1[%c0, %c0_0, %c0_1] : memref<1x80x192xf32, #tpu.memory_space<vmem>>, vector<1x56x192xf32>
    %1 = vector.shape_cast %0 : vector<1x56x192xf32> to vector<56x192xf32>
    %c0_2 = arith.constant 0 : index
    %c0_3 = arith.constant 0 : index
    %c0_4 = arith.constant 0 : index
    %2 = vector.load %arg2[%c0_2, %c0_3, %c0_4] : memref<9x192x128xf32, #tpu.memory_space<vmem>>, vector<1x192x128xf32>
    %3 = vector.shape_cast %2 : vector<1x192x128xf32> to vector<192x128xf32>
    %cst = arith.constant dense<0.000000e+00> : vector<56x128xf32>
    %4 = tpu.matmul %1, %3, %cst {dimension_numbers = #tpu.dot_dimension_numbers<[1], [0], [0], [1], [0, 0, 1, 1], [], []>} : vector<56x192xf32>, vector<192x128xf32>, vector<56x128xf32> -> vector<56x128xf32>
    %c0_5 = arith.constant 0 : index
    %c1 = arith.constant 1 : index
    %c0_6 = arith.constant 0 : index
    %5 = vector.load %arg1[%c0_5, %c1, %c0_6] : memref<1x80x192xf32, #tpu.memory_space<vmem>>, vector<1x56x192xf32>
    %6 = vector.shape_cast %5 : vector<1x56x192xf32> to vector<56x192xf32>
    %c1_7 = arith.constant 1 : index
    %c0_8 = arith.constant 0 : index
    %c0_9 = arith.constant 0 : index
    %7 = vector.load %arg2[%c1_7, %c0_8, %c0_9] : memref<9x192x128xf32, #tpu.memory_space<vmem>>, vector<1x192x128xf32>
    %8 = vector.shape_cast %7 : vector<1x192x128xf32> to vector<192x128xf32>
    %cst_10 = arith.constant dense<0.000000e+00> : vector<56x128xf32>
    %9 = tpu.matmul %6, %8, %cst_10 {dimension_numbers = #tpu.dot_dimension_numbers<[1], [0], [0], [1], [0, 0, 1, 1], [], []>} : vector<56x192xf32>, vector<192x128xf32>, vector<56x128xf32> -> vector<56x128xf32>
    %10 = arith.addf %4, %9 : vector<56x128xf32>
    %c0_11 = arith.constant 0 : index
    %c2 = arith.constant 2 : index
    %c0_12 = arith.constant 0 : index
    %11 = vector.load %arg1[%c0_11, %c2, %c0_12] : memref<1x80x192xf32, #tpu.memory_space<vmem>>, vector<1x56x192xf32>
    %12 = vector.shape_cast %11 : vector<1x56x192xf32> to vector<56x192xf32>
    %c2_13 = arith.constant 2 : index
    %c0_14 = arith.constant 0 : index
    %c0_15 = arith.constant 0 : index
    %13 = vector.load %arg2[%c2_13, %c0_14, %c0_15] : memref<9x192x128xf32, #tpu.memory_space<vmem>>, vector<1x192x128xf32>
    %14 = vector.shape_cast %13 : vector<1x192x128xf32> to vector<192x128xf32>
    %cst_16 = arith.constant dense<0.000000e+00> : vector<56x128xf32>
    %15 = tpu.matmul %12, %14, %cst_16 {dimension_numbers = #tpu.dot_dimension_numbers<[1], [0], [0], [1], [0, 0, 1, 1], [], []>} : vector<56x192xf32>, vector<192x128xf32>, vector<56x128xf32> -> vector<56x128xf32>
    %16 = arith.addf %10, %15 : vector<56x128xf32>
    %c0_17 = arith.constant 0 : index
    %c8 = arith.constant 8 : index
    %c0_18 = arith.constant 0 : index
    %17 = vector.load %arg1[%c0_17, %c8, %c0_18] : memref<1x80x192xf32, #tpu.memory_space<vmem>>, vector<1x56x192xf32>
    %18 = vector.shape_cast %17 : vector<1x56x192xf32> to vector<56x192xf32>
    %c3 = arith.constant 3 : index
    %c0_19 = arith.constant 0 : index
    %c0_20 = arith.constant 0 : index
    %19 = vector.load %arg2[%c3, %c0_19, %c0_20] : memref<9x192x128xf32, #tpu.memory_space<vmem>>, vector<1x192x128xf32>
    %20 = vector.shape_cast %19 : vector<1x192x128xf32> to vector<192x128xf32>
    %cst_21 = arith.constant dense<0.000000e+00> : vector<56x128xf32>
    %21 = tpu.matmul %18, %20, %cst_21 {dimension_numbers = #tpu.dot_dimension_numbers<[1], [0], [0], [1], [0, 0, 1, 1], [], []>} : vector<56x192xf32>, vector<192x128xf32>, vector<56x128xf32> -> vector<56x128xf32>
    %22 = arith.addf %16, %21 : vector<56x128xf32>
    %c0_22 = arith.constant 0 : index
    %c9 = arith.constant 9 : index
    %c0_23 = arith.constant 0 : index
    %23 = vector.load %arg1[%c0_22, %c9, %c0_23] : memref<1x80x192xf32, #tpu.memory_space<vmem>>, vector<1x56x192xf32>
    %24 = vector.shape_cast %23 : vector<1x56x192xf32> to vector<56x192xf32>
    %c4 = arith.constant 4 : index
    %c0_24 = arith.constant 0 : index
    %c0_25 = arith.constant 0 : index
    %25 = vector.load %arg2[%c4, %c0_24, %c0_25] : memref<9x192x128xf32, #tpu.memory_space<vmem>>, vector<1x192x128xf32>
    %26 = vector.shape_cast %25 : vector<1x192x128xf32> to vector<192x128xf32>
    %cst_26 = arith.constant dense<0.000000e+00> : vector<56x128xf32>
    %27 = tpu.matmul %24, %26, %cst_26 {dimension_numbers = #tpu.dot_dimension_numbers<[1], [0], [0], [1], [0, 0, 1, 1], [], []>} : vector<56x192xf32>, vector<192x128xf32>, vector<56x128xf32> -> vector<56x128xf32>
    %28 = arith.addf %22, %27 : vector<56x128xf32>
    %c0_27 = arith.constant 0 : index
    %c10 = arith.constant 10 : index
    %c0_28 = arith.constant 0 : index
    %29 = vector.load %arg1[%c0_27, %c10, %c0_28] : memref<1x80x192xf32, #tpu.memory_space<vmem>>, vector<1x56x192xf32>
    %30 = vector.shape_cast %29 : vector<1x56x192xf32> to vector<56x192xf32>
    %c5 = arith.constant 5 : index
    %c0_29 = arith.constant 0 : index
    %c0_30 = arith.constant 0 : index
    %31 = vector.load %arg2[%c5, %c0_29, %c0_30] : memref<9x192x128xf32, #tpu.memory_space<vmem>>, vector<1x192x128xf32>
    %32 = vector.shape_cast %31 : vector<1x192x128xf32> to vector<192x128xf32>
    %cst_31 = arith.constant dense<0.000000e+00> : vector<56x128xf32>
    %33 = tpu.matmul %30, %32, %cst_31 {dimension_numbers = #tpu.dot_dimension_numbers<[1], [0], [0], [1], [0, 0, 1, 1], [], []>} : vector<56x192xf32>, vector<192x128xf32>, vector<56x128xf32> -> vector<56x128xf32>
    %34 = arith.addf %28, %33 : vector<56x128xf32>
    %c0_32 = arith.constant 0 : index
    %c16 = arith.constant 16 : index
    %c0_33 = arith.constant 0 : index
    %35 = vector.load %arg1[%c0_32, %c16, %c0_33] : memref<1x80x192xf32, #tpu.memory_space<vmem>>, vector<1x56x192xf32>
    %36 = vector.shape_cast %35 : vector<1x56x192xf32> to vector<56x192xf32>
    %c6 = arith.constant 6 : index
    %c0_34 = arith.constant 0 : index
    %c0_35 = arith.constant 0 : index
    %37 = vector.load %arg2[%c6, %c0_34, %c0_35] : memref<9x192x128xf32, #tpu.memory_space<vmem>>, vector<1x192x128xf32>
    %38 = vector.shape_cast %37 : vector<1x192x128xf32> to vector<192x128xf32>
    %cst_36 = arith.constant dense<0.000000e+00> : vector<56x128xf32>
    %39 = tpu.matmul %36, %38, %cst_36 {dimension_numbers = #tpu.dot_dimension_numbers<[1], [0], [0], [1], [0, 0, 1, 1], [], []>} : vector<56x192xf32>, vector<192x128xf32>, vector<56x128xf32> -> vector<56x128xf32>
    %40 = arith.addf %34, %39 : vector<56x128xf32>
    %c0_37 = arith.constant 0 : index
    %c17 = arith.constant 17 : index
    %c0_38 = arith.constant 0 : index
    %41 = vector.load %arg1[%c0_37, %c17, %c0_38] : memref<1x80x192xf32, #tpu.memory_space<vmem>>, vector<1x56x192xf32>
    %42 = vector.shape_cast %41 : vector<1x56x192xf32> to vector<56x192xf32>
    %c7 = arith.constant 7 : index
    %c0_39 = arith.constant 0 : index
    %c0_40 = arith.constant 0 : index
    %43 = vector.load %arg2[%c7, %c0_39, %c0_40] : memref<9x192x128xf32, #tpu.memory_space<vmem>>, vector<1x192x128xf32>
    %44 = vector.shape_cast %43 : vector<1x192x128xf32> to vector<192x128xf32>
    %cst_41 = arith.constant dense<0.000000e+00> : vector<56x128xf32>
    %45 = tpu.matmul %42, %44, %cst_41 {dimension_numbers = #tpu.dot_dimension_numbers<[1], [0], [0], [1], [0, 0, 1, 1], [], []>} : vector<56x192xf32>, vector<192x128xf32>, vector<56x128xf32> -> vector<56x128xf32>
    %46 = arith.addf %40, %45 : vector<56x128xf32>
    %c0_42 = arith.constant 0 : index
    %c18 = arith.constant 18 : index
    %c0_43 = arith.constant 0 : index
    %47 = vector.load %arg1[%c0_42, %c18, %c0_43] : memref<1x80x192xf32, #tpu.memory_space<vmem>>, vector<1x56x192xf32>
    %48 = vector.shape_cast %47 : vector<1x56x192xf32> to vector<56x192xf32>
    %c8_44 = arith.constant 8 : index
    %c0_45 = arith.constant 0 : index
    %c0_46 = arith.constant 0 : index
    %49 = vector.load %arg2[%c8_44, %c0_45, %c0_46] : memref<9x192x128xf32, #tpu.memory_space<vmem>>, vector<1x192x128xf32>
    %50 = vector.shape_cast %49 : vector<1x192x128xf32> to vector<192x128xf32>
    %cst_47 = arith.constant dense<0.000000e+00> : vector<56x128xf32>
    %51 = tpu.matmul %48, %50, %cst_47 {dimension_numbers = #tpu.dot_dimension_numbers<[1], [0], [0], [1], [0, 0, 1, 1], [], []>} : vector<56x192xf32>, vector<192x128xf32>, vector<56x128xf32> -> vector<56x128xf32>
    %52 = arith.addf %46, %51 : vector<56x128xf32>
    %c0_48 = arith.constant 0 : index
    %c0_49 = arith.constant 0 : index
    %c0_50 = arith.constant 0 : index
    %53 = vector.load %arg3[%c0_48, %c0_49, %c0_50] : memref<1x56x128xf32, #tpu.memory_space<vmem>>, vector<1x56x128xf32>
    %54 = vector.shape_cast %53 : vector<1x56x128xf32> to vector<56x128xf32>
    %55 = vector.shape_cast %52 : vector<56x128xf32> to vector<1x56x128xf32>
    tpu.vector_store %arg3[%c0_48, %c0_49, %c0_50], %55 {strides = array<i32>} : memref<1x56x128xf32, #tpu.memory_space<vmem>>, vector<1x56x128xf32>,
    return
  }
  func.func @transform_0(%arg0: i32) -> (i32, i32, i32) {
    %c0_i32 = arith.constant 0 : i32
    %c0_i32_0 = arith.constant 0 : i32
    %c0_i32_1 = arith.constant 0 : i32
    return %arg0, %c0_i32, %c0_i32_0 : i32, i32, i32
  }
  func.func @transform_1(%arg0: i32) -> (i32, i32, i32) {
    %c0_i32 = arith.constant 0 : i32
    %c0_i32_0 = arith.constant 0 : i32
    %c0_i32_1 = arith.constant 0 : i32
    %c0_i32_2 = arith.constant 0 : i32
    return %c0_i32, %c0_i32_0, %c0_i32_1 : i32, i32, i32
  }
  func.func @transform_2(%arg0: i32) -> (i32, i32, i32) {
    %c0_i32 = arith.constant 0 : i32
    %c0_i32_0 = arith.constant 0 : i32
    %c0_i32_1 = arith.constant 0 : i32
    return %arg0, %c0_i32, %c0_i32_0 : i32, i32, i32
  }
}

</mosaic_0001>

<bundles_post_ra>
// kernel: forward.1
= control target key start
LH: loop header
LB: loop body
LE: loop exit
PB: predicated region body
PF: predicated region fallthrough
CT: control target
= control target key end

     0   :  { %7 = vsyncpa [#allocation3], 0  ;;  %s1825_s9 = smov [#allocation2]   ;;  %s2715_s0 = inlined_call_operand.vmem [shape: f32[1,80,192], index: 0, kind: input, shape index: {}]   ;;  %s2716_s1 = inlined_call_operand.hbm [shape: f32[9,192,128], index: 1, kind: input, shape index: {}]   ;;  %s2717_s2 = inlined_call_operand.vmem [shape: f32[1,56,128], index: 2, kind: output, shape index: {}]  }
   0x1   :  { %s15_s10 = sshll.u32 %s1825_s9, 4  ;;  %s16_s10 = int_to_ptr.vmem [resolvable:$true] %s15_s10 }
   0x2   :  { %s1811_s11 = scalar_lea.vmem %s16_s10, 27648  ;;  %p1816_p1 = scmp.lt.s32.totalorder %s16_s10, %s16_s10 }
   0x3   :  { %p1812_p0 = scmp.ne.s32.totalorder %s16_s10, %s1811_s11  ;;  %p1817_p2 = scmp.lt.s32.totalorder %s1811_s11, %s1811_s11 }
   0x5   :  { %p1818_p3 = por %p1817_p2, %p1816_p1 }
   0x7   :  { %p1819_p4 = pnand %p1818_p3, %p1812_p0 }
   0x9   :  { %1822 = shalt.err (!%p1819_p4)
}
   0xa   :  { %s1826_s12 = smov 128   ;;  %s1827_s13 = smov 8  }
   0xb   :  { %21 = dma.hbm_to_vmem [thread:$0]  %s2716_s1, 27648, %s16_s10, [#allocation3], %s1826_s12, %s1826_s12, %s1827_s13  }
   0xc   :  { %1823 = dma.done.wait [#allocation3], 27648  }
   0xd   :  { %1824 = vsyncadd [#allocation3], 4294939648  ;;  %v1828_v0 = vmov 0.0   ;;  %v83_v1 = vld [vmem:[#allocation2 + $0x138] sm:$0xff]  ;;  %v82_v3 = vld [vmem:[#allocation2 + $0x130] sm:$0xff]  ;;  %vm108_vm0 = vcmask 1046528  }
   0xe   :  { %161 = vmatprep.subr.mxu0 %v1828_v0  ;;  %276 = vmatprep.subr.mxu1 %v1828_v0  ;;  %v54_v2 = vld [vmem:[#allocation2 + $0x78] sm:$0xff]  ;;  %v53_v4 = vld [vmem:[#allocation2 + $0x70] sm:$0xff]  ;;  %v81_v5 = vld [vmem:[#allocation2 + $0x128] sm:$0xff]  ;;  %vm146_vm1 = vcmask 523264   ;;  %vm409_vm2 = vcmask 1045504  }
   0xf   :  { %162 = vmatpush1.msra.mxu0 %v83_v1  ;;  %277 = vmatpush1.msra.mxu1 %v54_v2  ;;  %v52_v6 = vld [vmem:[#allocation2 + $0x68] sm:$0xff]  ;;  %v80_v7 = vld [vmem:[#allocation2 + $0x120] sm:$0xff]  ;;  %v79_v9 = vld [vmem:[#allocation2 + $0x118] sm:$0xff] }
  0x10   :  { %163 = vmatprep.subr.mxu0 %v1828_v0  ;;  %278 = vmatprep.subr.mxu1 %v1828_v0  ;;  %v51_v8 = vld [vmem:[#allocation2 + $0x60] sm:$0xff]  ;;  %v50_v10 = vld [vmem:[#allocation2 + $0x58] sm:$0xff]  ;;  %v78_v11 = vld [vmem:[#allocation2 + $0x110] sm:$0xff] }
  0x11   :  { %164 = vmatpush1.msra.mxu0 %v82_v3  ;;  %279 = vmatpush1.msra.mxu1 %v53_v4  ;;  %v49_v12 = vld [vmem:[#allocation2 + $0x50] sm:$0xff]  ;;  %v77_v13 = vld [vmem:[#allocation2 + $0x108] sm:$0xff]  ;;  %v76_v15 = vld [vmem:[#allocation2 + $0x100] sm:$0xff] }
  0x12   :  { %165 = vmatprep.subr.mxu0 %v1828_v0  ;;  %280 = vmatprep.subr.mxu1 %v1828_v0  ;;  %v48_v14 = vld [vmem:[#allocation2 + $0x48] sm:$0xff]  ;;  %v47_v16 = vld [vmem:[#allocation2 + $0x40] sm:$0xff]  ;;  %v75_v17 = vld [vmem:[#allocation2 + $0xf8] sm:$0xff] }
  0x13   :  { %166 = vmatpush1.msra.mxu0 %v81_v5  ;;  %281 = vmatpush1.msra.mxu1 %v52_v6  ;;  %v46_v18 = vld [vmem:[#allocation2 + $0x38] sm:$0xff]  ;;  %v74_v19 = vld [vmem:[#allocation2 + $0xf0] sm:$0xff]  ;;  %v73_v21 = vld [vmem:[#allocation2 + $0xe8] sm:$0xff] }
  0x14   :  { %167 = vmatprep.subr.mxu0 %v1828_v0  ;;  %282 = vmatprep.subr.mxu1 %v1828_v0  ;;  %v45_v20 = vld [vmem:[#allocation2 + $0x30] sm:$0xff]  ;;  %v44_v22 = vld [vmem:[#allocation2 + $0x28] sm:$0xff]  ;;  %v72_v23 = vld [vmem:[#allocation2 + $0xe0] sm:$0xff] }
  0x15   :  { %168 = vmatpush1.msra.mxu0 %v80_v7  ;;  %283 = vmatpush1.msra.mxu1 %v51_v8  ;;  %v43_v24 = vld [vmem:[#allocation2 + $0x20] sm:$0xff]  ;;  %v71_v25 = vld [vmem:[#allocation2 + $0xd8] sm:$0xff]  ;;  %v70_v27 = vld [vmem:[#allocation2 + $0xd0] sm:$0xff] }
  0x16   :  { %169 = vmatprep.subr.mxu0 %v1828_v0  ;;  %284 = vmatprep.subr.mxu1 %v1828_v0  ;;  %v42_v26 = vld [vmem:[#allocation2 + $0x18] sm:$0xff]  ;;  %v41_v28 = vld [vmem:[#allocation2 + $0x10] sm:$0xff]  ;;  %v69_v29 = vld [vmem:[#allocation2 + $0xc8] sm:$0xff] }
  0x17   :  { %170 = vmatpush1.msra.mxu0 %v79_v9  ;;  %285 = vmatpush1.msra.mxu1 %v50_v10  ;;  %v40_v30 = vld [vmem:[#allocation2 + $0x8] sm:$0xff]  ;;  %v68_v31 = vld [vmem:[#allocation2 + $0xc0] sm:$0xff]  ;;  %v91_v33 = vld [vmem:[#allocation2 + $0x178] sm:$0xff] }
  0x18   :  { %171 = vmatprep.subr.mxu0 %v1828_v0  ;;  %286 = vmatprep.subr.mxu1 %v1828_v0  ;;  %v39_v32 = vld [vmem:[#allocation2] sm:$0xff]  ;;  %v62_v34 = vld [vmem:[#allocation2 + $0xb8] sm:$0xff]  ;;  %v90_v35 = vld [vmem:[#allocation2 + $0x170] sm:$0xff] }
  0x19   :  { %172 = vmatpush1.msra.mxu0 %v78_v11  ;;  %287 = vmatpush1.msra.mxu1 %v49_v12  ;;  %v61_v36 = vld [vmem:[#allocation2 + $0xb0] sm:$0xff]  ;;  %v89_v37 = vld [vmem:[#allocation2 + $0x168] sm:$0xff]  ;;  %v88_v39 = vld [vmem:[#allocation2 + $0x160] sm:$0xff] }
  0x1a   :  { %173 = vmatprep.subr.mxu0 %v1828_v0  ;;  %288 = vmatprep.subr.mxu1 %v1828_v0  ;;  %v60_v38 = vld [vmem:[#allocation2 + $0xa8] sm:$0xff]  ;;  %v59_v40 = vld [vmem:[#allocation2 + $0xa0] sm:$0xff]  ;;  %v87_v41 = vld [vmem:[#allocation2 + $0x158] sm:$0xff] }
  0x1b   :  { %174 = vmatpush1.msra.mxu0 %v77_v13  ;;  %289 = vmatpush1.msra.mxu1 %v48_v14  ;;  %v1888_v42 = vld [vmem:[%s2715_s0 + $0x18] sm:$0xff]  ;;  %v64_v43 = vld [vmem:[%s2715_s0 + $0x8] sm:$0xfe]  ;;  %v1898_v45 = vld [vmem:[%s2715_s0 + $0x10] sm:$0xff] }
  0x1c   :  { %175 = vmatprep.subr.mxu0 %v1828_v0  ;;  %290 = vmatprep.subr.mxu1 %v1828_v0  ;;  %v58_v44 = vld [vmem:[#allocation2 + $0x98] sm:$0xff]  ;;  %v63_v46 = vld [vmem:[%s2715_s0] sm:$0xfe]  ;;  %v86_v47 = vld [vmem:[#allocation2 + $0x150] sm:$0xff]  ;;  %v112_v49 = vrot.slane %v64_v43, 1  ;;  %v113_v50 = vrot.slane %v1888_v42, 1 }
  0x1d   :  { %176 = vmatpush1.msra.mxu0 %v76_v15  ;;  %291 = vmatpush1.msra.mxu1 %v47_v16  ;;  %v57_v48 = vld [vmem:[#allocation2 + $0x90] sm:$0xff]  ;;  %v109_v51 = vrot.slane %v63_v46, 1  ;;  %v110_v52 = vrot.slane %v1898_v45, 1  ;;  %v85_v53 = vld [vmem:[#allocation2 + $0x148] sm:$0xff]  ;;  %v84_v55 = vld [vmem:[#allocation2 + $0x140] sm:$0xff] }
  0x1e   :  { %177 = vmatprep.subr.mxu0 %v1828_v0  ;;  %292 = vmatprep.subr.mxu1 %v1828_v0  ;;  %v56_v54 = vld [vmem:[#allocation2 + $0x88] sm:$0xff]  ;;  %v114_v56 = vsel %vm108_vm0, %v112_v49, %v113_v50  ;;  %v55_v57 = vld [vmem:[#allocation2 + $0x80] sm:$0xff]  ;;  %v396_v61 = vld [vmem:[#allocation2 + $0x1f8] sm:$0xff] }
  0x1f   :  { %178 = vmatpush1.msra.mxu0 %v75_v17  ;;  %293 = vmatpush1.msra.mxu1 %v46_v18  ;;  %v111_v58 = vsel %vm108_vm0, %v109_v51, %v110_v52  ;;  %v26_v59 = vld [vmem:[%s2715_s0 + $0x8] sm:$0xff]  ;;  %v25_v60 = vld [vmem:[%s2715_s0] sm:$0xff]  ;;  %v586_v62 = vld [vmem:[#allocation2 + $0x2b8] sm:$0xff] }
  0x20   :  { %179 = vmatprep.subr.mxu0 %v1828_v0  ;;  %294 = vmatprep.subr.mxu1 %v1828_v0  ;;  %v395_v63 = vld [vmem:[#allocation2 + $0x1f0] sm:$0xff]  ;;  %v394_v2 = vld [vmem:[#allocation2 + $0x1e8] sm:$0xff]  ;;  %v393_v4 = vld [vmem:[#allocation2 + $0x1e0] sm:$0xff] }
  0x21   :  { %180 = vmatpush1.msra.mxu0 %v74_v19  ;;  %295 = vmatpush1.msra.mxu1 %v45_v20  ;;  %v585_v1 = vld [vmem:[#allocation2 + $0x2b0] sm:$0xff]  ;;  %v584_v3 = vld [vmem:[#allocation2 + $0x2a8] sm:$0xff]  ;;  %v583_v5 = vld [vmem:[#allocation2 + $0x2a0] sm:$0xff] }
  0x22   :  { %181 = vmatprep.subr.mxu0 %v1828_v0  ;;  %296 = vmatprep.subr.mxu1 %v1828_v0  ;;  %v392_v6 = vld [vmem:[#allocation2 + $0x1d8] sm:$0xff]  ;;  %v391_v8 = vld [vmem:[#allocation2 + $0x1d0] sm:$0xff]  ;;  %v390_v10 = vld [vmem:[#allocation2 + $0x1c8] sm:$0xff] }
  0x23   :  { %182 = vmatpush1.msra.mxu0 %v73_v21  ;;  %297 = vmatpush1.msra.mxu1 %v44_v22  ;;  %v582_v7 = vld [vmem:[#allocation2 + $0x298] sm:$0xff]  ;;  %v581_v9 = vld [vmem:[#allocation2 + $0x290] sm:$0xff]  ;;  %v580_v11 = vld [vmem:[#allocation2 + $0x288] sm:$0xff] }
  0x24   :  { %183 = vmatprep.subr.mxu0 %v1828_v0  ;;  %298 = vmatprep.subr.mxu1 %v1828_v0  ;;  %v389_v12 = vld [vmem:[#allocation2 + $0x1c0] sm:$0xff]  ;;  %v1944_v14 = vld [vmem:[%s2715_s0 + $0x28] sm:$0xff]  ;;  %v388_v16 = vld [vmem:[#allocation2 + $0x1b8] sm:$0xff] }
  0x25   :  { %184 = vmatpush1.msra.mxu0 %v72_v23  ;;  %299 = vmatpush1.msra.mxu1 %v43_v24  ;;  %v579_v13 = vld [vmem:[#allocation2 + $0x280] sm:$0xff]  ;;  %v578_v17 = vld [vmem:[#allocation2 + $0x278] sm:$0xff]  ;;  %v1954_v18 = vrot.slane %v1944_v14, 1  ;;  %v387_v19 = vld [vmem:[#allocation2 + $0x1b0] sm:$0xff] }
  0x26   :  { %185 = vmatprep.subr.mxu0 %v1828_v0  ;;  %300 = vmatprep.subr.mxu1 %v1828_v0  ;;  %v1949_v15 = vld [vmem:[%s2715_s0 + $0x20] sm:$0xff]  ;;  %v577_v20 = vld [vmem:[#allocation2 + $0x270] sm:$0xff]  ;;  %v386_v22 = vld [vmem:[#allocation2 + $0x1a8] sm:$0xff] }
  0x27   :  { %186 = vmatpush1.msra.mxu0 %v71_v25  ;;  %301 = vmatpush1.msra.mxu1 %v42_v26  ;;  %v1959_v21 = vrot.slane %v1949_v15, 1  ;;  %v576_v23 = vld [vmem:[#allocation2 + $0x268] sm:$0xff]  ;;  %v1966_v24 = vld [vmem:[%s2715_s0 + $0x38] sm:$0xff]  ;;  %v118_v25 = vsel %vm108_vm0, %v113_v50, %v1954_v18  ;;  %v1975_v26 = vld [vmem:[%s2715_s0 + $0x30] sm:$0xff] }
  0x28   :  { %187 = vmatprep.subr.mxu0 %v1828_v0  ;;  %302 = vmatprep.subr.mxu1 %v1828_v0  ;;  %v382_v43 = vld [vmem:[#allocation2 + $0x188] sm:$0xff]  ;;  %v2021_v46 = vld [vmem:[%s2715_s0 + $0x58] sm:$0xff]  ;;  %v381_v50 = vld [vmem:[#allocation2 + $0x180] sm:$0xff] }
  0x29   :  { %188 = vmatpush1.msra.mxu0 %v70_v27  ;;  %303 = vmatpush1.msra.mxu1 %v41_v28  ;;  %v116_v27 = vsel %vm108_vm0, %v110_v52, %v1959_v21  ;;  %v385_v28 = vld [vmem:[#allocation2 + $0x1a0] sm:$0xff]  ;;  %v129_v52 = vrot.slane %v2021_v46, 1 }
  0x2a   :  { %189 = vmatprep.subr.mxu0 %v1828_v0  ;;  %304 = vmatprep.subr.mxu1 %v1828_v0  ;;  %v571_v51 = vld [vmem:[#allocation2 + $0x240] sm:$0xff] }
  0x2b   :  { %190 = vmatpush1.msra.mxu0 %v69_v29  ;;  %305 = vmatpush1.msra.mxu1 %v40_v30  ;;  %v575_v29 = vld [vmem:[#allocation2 + $0x260] sm:$0xff]  ;;  %v121_v30 = vrot.slane %v1966_v24, 1 }
  0x2c   :  { %191 = vmatprep.subr.mxu0 %v1828_v0  ;;  %306 = vmatprep.subr.mxu1 %v1828_v0 }
  0x2d   :  { %192 = vmatpush1.msra.mxu0 %v68_v31  ;;  %307 = vmatpush1.msra.mxu1 %v39_v32  ;;  %v119_v31 = vrot.slane %v1975_v26, 1  ;;  %v384_v32 = vld [vmem:[#allocation2 + $0x198] sm:$0xff] }
  0x2e   :  { %209 = vmatprep.subr.mxu0 %v1828_v0  ;;  %324 = vmatprep.subr.mxu1 %v1828_v0 }
  0x2f   :  { %210 = vmatpush2.msra.mxu0 %v91_v33  ;;  %325 = vmatpush2.msra.mxu1 %v62_v34  ;;  %v574_v33 = vld [vmem:[#allocation2 + $0x258] sm:$0xff]  ;;  %v1991_v34 = vld [vmem:[%s2715_s0 + $0x48] sm:$0xff] }
  0x30   :  { %211 = vmatprep.subr.mxu0 %v1828_v0  ;;  %326 = vmatprep.subr.mxu1 %v1828_v0 }
  0x31   :  { %212 = vmatpush2.msra.mxu0 %v90_v35  ;;  %327 = vmatpush2.msra.mxu1 %v61_v36  ;;  %v1998_v35 = vsel %vm108_vm0, %v1954_v18, %v121_v30  ;;  %v2003_v36 = vld [vmem:[%s2715_s0 + $0x40] sm:$0xff] }
  0x32   :  { %213 = vmatprep.subr.mxu0 %v1828_v0  ;;  %328 = vmatprep.subr.mxu1 %v1828_v0 }
  0x33   :  { %214 = vmatpush2.msra.mxu0 %v89_v37  ;;  %329 = vmatpush2.msra.mxu1 %v60_v38  ;;  %v2009_v37 = vsel %vm108_vm0, %v1959_v21, %v119_v31  ;;  %v383_v38 = vld [vmem:[#allocation2 + $0x190] sm:$0xff] }
  0x34   :  { %215 = vmatprep.subr.mxu0 %v1828_v0  ;;  %330 = vmatprep.subr.mxu1 %v1828_v0 }
  0x35   :  { %216 = vmatpush2.msra.mxu0 %v88_v39  ;;  %331 = vmatpush2.msra.mxu1 %v59_v40  ;;  %v573_v39 = vld [vmem:[#allocation2 + $0x250] sm:$0xff]  ;;  %v125_v40 = vrot.slane %v1991_v34, 1 }
  0x36   :  { %217 = vmatprep.subr.mxu0 %v1828_v0  ;;  %332 = vmatprep.subr.mxu1 %v1828_v0 }
  0x37   :  { %218 = vmatpush2.msra.mxu0 %v87_v41  ;;  %333 = vmatpush2.msra.mxu1 %v58_v44  ;;  %v123_v41 = vrot.slane %v2003_v36, 1  ;;  %v572_v44 = vld [vmem:[#allocation2 + $0x248] sm:$0xff] }
  0x38   :  { %219 = vmatprep.subr.mxu0 %v1828_v0  ;;  %334 = vmatprep.subr.mxu1 %v1828_v0 }
  0x39   :  { %220 = vmatpush2.msra.mxu0 %v86_v47  ;;  %335 = vmatpush2.msra.mxu1 %v57_v48  ;;  %v2027_v47 = vsel %vm108_vm0, %v121_v30, %v125_v40  ;;  %v2032_v48 = vld [vmem:[%s2715_s0 + $0x50] sm:$0xff]  ;;  %v2037_v49 = vsel %vm108_vm0, %v119_v31, %v123_v41  ;;  %v588_v30 = vld [vmem:[#allocation2 + $0x2c8] sm:$0xff]  ;;  %v397_v31 = vld [vmem:[#allocation2 + $0x200] sm:$0xff] }
  0x3a   :  { %221 = vmatprep.subr.mxu0 %v1828_v0  ;;  %336 = vmatprep.subr.mxu1 %v1828_v0 }
  0x3b   :  { %222 = vmatpush2.msra.mxu0 %v85_v53  ;;  %337 = vmatpush2.msra.mxu1 %v56_v54  ;;  %v127_v53 = vrot.slane %v2032_v48, 1  ;;  %v404_v54 = vld [vmem:[#allocation2 + $0x238] sm:$0xff] }
  0x3c   :  { %223 = vmatprep.subr.mxu0 %v1828_v0  ;;  %338 = vmatprep.subr.mxu1 %v1828_v0 }
  0x3d   :  { %224 = vmatpush2.msra.mxu0 %v84_v55  ;;  %1678 = vmatprep.mubr.msk.f32.mxu0 %vm146_vm1, %v114_v56  ;;  %v594_v55 = vld [vmem:[#allocation2 + $0x2f8] sm:$0xff]  ;;  %v2049_v56 = vld [vmem:[%s2715_s0 + $0x68] sm:$0xff] }
  0x3e   :  { %339 = vmatpush2.msra.mxu1 %v55_v57  ;;  %226 = vmatmul.mubr.f32.vlgmr.msra.gmra.mxu0 %v111_v58  ;;  %v2055_v57 = vsel %vm108_vm0, %v125_v40, %v129_v52  ;;  %v2060_v58 = vld [vmem:[%s2715_s0 + $0x60] sm:$0xff]  ;;  %v2136_v40 = vrot.slane %v1949_v15, 2 }
  0x3f   :  { %1685 = vmatprep.mubr.msk.f32.mxu1 %vm146_vm1, %v26_v59  ;;  %461 = vmatprep.subr.mxu0 %v1828_v0  ;;  %v2065_v59 = vsel %vm108_vm0, %v123_v41, %v127_v53  ;;  %v737_v41 = vld [vmem:[#allocation2 + $0x378] sm:$0xff] }
  0x40   :  { %598 = vmatprep.subr.mxu1 %v1828_v0  ;;  %341 = vmatmul.mubr.f32.vlgmr.msra.gmra.mxu1 %v25_v60  ;;  %v403_v60 = vld [vmem:[#allocation2 + $0x230] sm:$0xff] }
  0x41   :  { %462 = vmatpush1.msra.mxu0 %v396_v61  ;;  %599 = vmatpush1.msra.mxu1 %v586_v62  ;;  %v593_v61 = vld [vmem:[#allocation2 + $0x2f0] sm:$0xff]  ;;  %v2068_v62 = vrot.slane %v2049_v56, 1 }
  0x42   :  { %463 = vmatprep.subr.mxu0 %v1828_v0  ;;  %600 = vmatprep.subr.mxu1 %v1828_v0 }
  0x43   :  { %464 = vmatpush1.msra.mxu0 %v395_v63  ;;  %601 = vmatpush1.msra.mxu1 %v585_v1  ;;  %v2074_v63 = vrot.slane %v2060_v58, 1  ;;  %v402_v1 = vld [vmem:[#allocation2 + $0x228] sm:$0xff] }
  0x44   :  { %465 = vmatprep.subr.mxu0 %v1828_v0  ;;  %602 = vmatprep.subr.mxu1 %v1828_v0 }
  0x45   :  { %466 = vmatpush1.msra.mxu0 %v394_v2  ;;  %603 = vmatpush1.msra.mxu1 %v584_v3  ;;  %v592_v2 = vld [vmem:[#allocation2 + $0x2e8] sm:$0xff]  ;;  %v66_v3 = vld [vmem:[%s2715_s0 + $0x78] sm:$0x1] }
  0x46   :  { %467 = vmatprep.subr.mxu0 %v1828_v0  ;;  %604 = vmatprep.subr.mxu1 %v1828_v0 }
  0x47   :  { %468 = vmatpush1.msra.mxu0 %v393_v4  ;;  %605 = vmatpush1.msra.mxu1 %v583_v5  ;;  %v2086_v4 = vsel %vm108_vm0, %v129_v52, %v2068_v62  ;;  %v65_v5 = vld [vmem:[%s2715_s0 + $0x70] sm:$0x1] }
  0x48   :  { %469 = vmatprep.subr.mxu0 %v1828_v0  ;;  %606 = vmatprep.subr.mxu1 %v1828_v0 }
  0x49   :  { %470 = vmatpush1.msra.mxu0 %v392_v6  ;;  %607 = vmatpush1.msra.mxu1 %v582_v7  ;;  %v2095_v6 = vsel %vm108_vm0, %v127_v53, %v2074_v63  ;;  %v401_v7 = vld [vmem:[#allocation2 + $0x220] sm:$0xff]  ;;  %v420_v53 = vrot.slane %v1975_v26, 2 }
  0x4a   :  { %471 = vmatprep.subr.mxu0 %v1828_v0  ;;  %608 = vmatprep.subr.mxu1 %v1828_v0 }
  0x4b   :  { %472 = vmatpush1.msra.mxu0 %v391_v8  ;;  %609 = vmatpush1.msra.mxu1 %v581_v9  ;;  %v591_v8 = vld [vmem:[#allocation2 + $0x2e0] sm:$0xff]  ;;  %v137_v9 = vrot.slane %v66_v3, 1  ;;  %v424_v3 = vrot.slane %v2003_v36, 2 }
  0x4c   :  { %473 = vmatprep.subr.mxu0 %v1828_v0  ;;  %610 = vmatprep.subr.mxu1 %v1828_v0 }
  0x4d   :  { %474 = vmatpush1.msra.mxu0 %v390_v10  ;;  %611 = vmatpush1.msra.mxu1 %v580_v11  ;;  %v135_v10 = vrot.slane %v65_v5, 1  ;;  %v400_v11 = vld [vmem:[#allocation2 + $0x218] sm:$0xff] }
  0x4e   :  { %475 = vmatprep.subr.mxu0 %v1828_v0  ;;  %612 = vmatprep.subr.mxu1 %v1828_v0  ;;  %v936_v5 = vld [vmem:[#allocation2 + $0x418] sm:$0xff] }
  0x4f   :  { %476 = vmatpush1.msra.mxu0 %v389_v12  ;;  %613 = vmatpush1.msra.mxu1 %v579_v13  ;;  %v590_v12 = vld [vmem:[#allocation2 + $0x2d8] sm:$0xff]  ;;  %v138_v13 = vsel %vm108_vm0, %v2068_v62, %v137_v9  ;;  %v2181_v9 = vsel %vm409_vm2, %v420_v53, %v424_v3 }
  0x50   :  { %477 = vmatprep.subr.mxu0 %v1828_v0  ;;  %614 = vmatprep.subr.mxu1 %v1828_v0 }
  0x51   :  { %478 = vmatpush1.msra.mxu0 %v388_v16  ;;  %615 = vmatpush1.msra.mxu1 %v578_v17  ;;  %v377_v16 = vld [vmem:[%s2715_s0 + $0x8] sm:$0xfc]  ;;  %v136_v17 = vsel %vm108_vm0, %v2074_v63, %v135_v10  ;;  %v430_v10 = vrot.slane %v2021_v46, 2 }
  0x52   :  { %479 = vmatprep.subr.mxu0 %v1828_v0  ;;  %616 = vmatprep.subr.mxu1 %v1828_v0 }
  0x53   :  { %480 = vmatpush1.msra.mxu0 %v387_v19  ;;  %617 = vmatpush1.msra.mxu1 %v577_v20  ;;  %v376_v19 = vld [vmem:[%s2715_s0] sm:$0xfc]  ;;  %v399_v20 = vld [vmem:[#allocation2 + $0x210] sm:$0xff] }
  0x54   :  { %481 = vmatprep.subr.mxu0 %v1828_v0  ;;  %618 = vmatprep.subr.mxu1 %v1828_v0 }
  0x55   :  { %482 = vmatpush1.msra.mxu0 %v386_v22  ;;  %619 = vmatpush1.msra.mxu1 %v576_v23  ;;  %v589_v22 = vld [vmem:[#allocation2 + $0x2d0] sm:$0xff]  ;;  %v413_v23 = vrot.slane %v377_v16, 2  ;;  %v933_v16 = vld [vmem:[#allocation2 + $0x400] sm:$0xff] }
  0x56   :  { %1679 = vmatprep.mubr.msk.f32.mxu0 %vm146_vm1, %v118_v25  ;;  %483 = vmatprep.subr.mxu0 %v1828_v0  ;;  %v414_v25 = vrot.slane %v1888_v42, 2 }
  0x57   :  { %620 = vmatprep.subr.mxu1 %v1828_v0  ;;  %231 = vmatmul.mubr.f32.gmra.mxu0 %v116_v27  ;;  %v410_v27 = vrot.slane %v376_v19, 2  ;;  %v2204_v19 = vrot.slane %v2049_v56, 2 }
  0x58   :  { %484 = vmatpush1.msra.mxu0 %v385_v28  ;;  %621 = vmatpush1.msra.mxu1 %v575_v29  ;;  %v411_v28 = vrot.slane %v1898_v45, 2  ;;  %v398_v29 = vld [vmem:[#allocation2 + $0x208] sm:$0xff] }
  0x59   :  { %1686 = vmatprep.mubr.msk.f32.mxu1 %vm146_vm1, %v1888_v42  ;;  %485 = vmatprep.subr.mxu0 %v1828_v0 }
  0x5a   :  { %622 = vmatprep.subr.mxu1 %v1828_v0  ;;  %346 = vmatmul.mubr.f32.gmra.mxu1 %v1898_v45  ;;  %v417_v52 = vsel %vm409_vm2, %v411_v28, %v2136_v40 }
  0x5b   :  { %486 = vmatpush1.msra.mxu0 %v384_v32  ;;  %623 = vmatpush1.msra.mxu1 %v574_v33  ;;  %v415_v32 = vsel %vm409_vm2, %v413_v23, %v414_v25  ;;  %v587_v33 = vld [vmem:[#allocation2 + $0x2c0] sm:$0xff]  ;;  %v2221_v23 = vsel %vm409_vm2, %v430_v10, %v2204_v19 }
  0x5c   :  { %1680 = vmatprep.mubr.msk.f32.mxu0 %vm146_vm1, %v1998_v35  ;;  %487 = vmatprep.subr.mxu0 %v1828_v0 }
  0x5d   :  { %624 = vmatprep.subr.mxu1 %v1828_v0  ;;  %236 = vmatmul.mubr.f32.gmra.mxu0 %v2009_v37 }
  0x5e   :  { %488 = vmatpush1.msra.mxu0 %v383_v38  ;;  %625 = vmatpush1.msra.mxu1 %v573_v39  ;;  %v412_v38 = vsel %vm409_vm2, %v410_v27, %v411_v28  ;;  %v2132_v39 = vrot.slane %v1944_v14, 2  ;;  %v378_v27 = vld [vmem:[%s2715_s0 + $0x70] sm:$0x3] }
  0x5f   :  { %1687 = vmatprep.mubr.msk.f32.mxu1 %vm146_vm1, %v1944_v14  ;;  %489 = vmatprep.subr.mxu0 %v1828_v0  ;;  %v931_v28 = vld [vmem:[#allocation2 + $0x3f0] sm:$0xff] }
  0x60   :  { %626 = vmatprep.subr.mxu1 %v1828_v0  ;;  %351 = vmatmul.mubr.f32.gmra.mxu1 %v1949_v15 }
  0x61   :  { %490 = vmatpush1.msra.mxu0 %v382_v43  ;;  %627 = vmatpush1.msra.mxu1 %v572_v44  ;;  %v940_v43 = vld [vmem:[#allocation2 + $0x438] sm:$0xff]  ;;  %v419_v44 = vsel %vm409_vm2, %v414_v25, %v2132_v39  ;;  %v728_v25 = vld [vmem:[#allocation2 + $0x330] sm:$0xff] }
  0x62   :  { %1681 = vmatprep.mubr.msk.f32.mxu0 %vm146_vm1, %v2027_v47  ;;  %491 = vmatprep.subr.mxu0 %v1828_v0 }
  0x63   :  { %628 = vmatprep.subr.mxu1 %v1828_v0  ;;  %241 = vmatmul.mubr.f32.gmra.mxu0 %v2037_v49 }
  0x64   :  { %492 = vmatpush1.msra.mxu0 %v381_v50  ;;  %629 = vmatpush1.msra.mxu1 %v571_v51  ;;  %v736_v50 = vld [vmem:[#allocation2 + $0x370] sm:$0xff] }
  0x65   :  { %1688 = vmatprep.mubr.msk.f32.mxu1 %vm146_vm1, %v1966_v24  ;;  %509 = vmatprep.subr.mxu0 %v1828_v0  ;;  %v939_v51 = vld [vmem:[#allocation2 + $0x430] sm:$0xff] }
  0x66   :  { %646 = vmatprep.subr.mxu1 %v1828_v0  ;;  %356 = vmatmul.mubr.f32.gmra.mxu1 %v1975_v26 }
  0x67   :  { %510 = vmatpush2.msra.mxu0 %v404_v54  ;;  %647 = vmatpush2.msra.mxu1 %v594_v55  ;;  %v938_v54 = vld [vmem:[#allocation2 + $0x428] sm:$0xff] }
  0x68   :  { %1682 = vmatprep.mubr.msk.f32.mxu0 %vm146_vm1, %v2055_v57  ;;  %511 = vmatprep.subr.mxu0 %v1828_v0 }
  0x69   :  { %648 = vmatprep.subr.mxu1 %v1828_v0  ;;  %246 = vmatmul.mubr.f32.gmra.mxu0 %v2065_v59 }
  0x6a   :  { %512 = vmatpush2.msra.mxu0 %v403_v60  ;;  %649 = vmatpush2.msra.mxu1 %v593_v61  ;;  %v734_v60 = vld [vmem:[#allocation2 + $0x360] sm:$0xff] }
  0x6b   :  { %1689 = vmatprep.mubr.msk.f32.mxu1 %vm146_vm1, %v1991_v34  ;;  %513 = vmatprep.subr.mxu0 %v1828_v0  ;;  %v937_v61 = vld [vmem:[#allocation2 + $0x420] sm:$0xff] }
  0x6c   :  { %650 = vmatprep.subr.mxu1 %v1828_v0  ;;  %361 = vmatmul.mubr.f32.gmra.mxu1 %v2003_v36 }
  0x6d   :  { %514 = vmatpush2.msra.mxu0 %v402_v1  ;;  %651 = vmatpush2.msra.mxu1 %v592_v2  ;;  %v2163_v1 = vsel %vm409_vm2, %v2136_v40, %v420_v53  ;;  %v733_v2 = vld [vmem:[#allocation2 + $0x358] sm:$0xff]  ;;  %v925_v53 = vld [vmem:[#allocation2 + $0x3c0] sm:$0xff] }
  0x6e   :  { %1683 = vmatprep.mubr.msk.f32.mxu0 %vm146_vm1, %v2086_v4  ;;  %515 = vmatprep.subr.mxu0 %v1828_v0 }
  0x6f   :  { %652 = vmatprep.subr.mxu1 %v1828_v0  ;;  %251 = vmatmul.mubr.f32.gmra.mxu0 %v2095_v6 }
  0x70   :  { %516 = vmatpush2.msra.mxu0 %v401_v7  ;;  %653 = vmatpush2.msra.mxu1 %v591_v8  ;;  %v732_v7 = vld [vmem:[#allocation2 + $0x350] sm:$0xff] }
  0x71   :  { %1690 = vmatprep.mubr.msk.f32.mxu1 %vm146_vm1, %v2021_v46  ;;  %517 = vmatprep.subr.mxu0 %v1828_v0  ;;  %v935_v8 = vld [vmem:[#allocation2 + $0x410] sm:$0xff] }
  0x72   :  { %654 = vmatprep.subr.mxu1 %v1828_v0  ;;  %366 = vmatmul.mubr.f32.gmra.mxu1 %v2032_v48 }
  0x73   :  { %518 = vmatpush2.msra.mxu0 %v400_v11  ;;  %655 = vmatpush2.msra.mxu1 %v590_v12  ;;  %v428_v11 = vrot.slane %v2032_v48, 2  ;;  %v934_v12 = vld [vmem:[#allocation2 + $0x408] sm:$0xff] }
  0x74   :  { %1684 = vmatprep.mubr.msk.f32.mxu0 %vm146_vm1, %v138_v13  ;;  %519 = vmatprep.subr.mxu0 %v1828_v0  ;;  %v730_v13 = vld [vmem:[#allocation2 + $0x340] sm:$0xff] }
  0x75   :  { %656 = vmatprep.subr.mxu1 %v1828_v0  ;;  %256 = vmatmul.mubr.f32.gmra.mxu0 %v136_v17  ;;  %v2199_v17 = vsel %vm409_vm2, %v424_v3, %v428_v11  ;;  %v946_v3 = vld [vmem:[#allocation2 + $0x468] sm:$0xff] }
  0x76   :  { %520 = vmatpush2.msra.mxu0 %v399_v20  ;;  %657 = vmatpush2.msra.mxu1 %v589_v22  ;;  %v2209_v20 = vrot.slane %v2060_v58, 2  ;;  %v932_v22 = vld [vmem:[#allocation2 + $0x3f8] sm:$0xff] }
  0x77   :  { %1691 = vmatprep.mubr.msk.f32.mxu1 %vm146_vm1, %v2049_v56  ;;  %521 = vmatprep.subr.mxu0 %v1828_v0 }
  0x78   :  { %658 = vmatprep.subr.mxu1 %v1828_v0  ;;  %371 = vmatmul.mubr.f32.gmra.mxu1 %v2060_v58 }
  0x79   :  { %522 = vmatpush2.msra.mxu0 %v398_v29  ;;  %659 = vmatpush2.msra.mxu1 %v588_v30  ;;  %v2229_v29 = vsel %vm409_vm2, %v428_v11, %v2209_v20  ;;  %v727_v30 = vld [vmem:[#allocation2 + $0x328] sm:$0xff]  ;;  %v705_v11 = vld [vmem:[%s2715_s0 + $0x10] sm:$0xfe] }
  0x7a   :  { %523 = vmatprep.subr.mxu0 %v1828_v0  ;;  %660 = vmatprep.subr.mxu1 %v1828_v0 }
  0x7b   :  { %524 = vmatpush2.msra.mxu0 %v397_v31  ;;  %1692 = vmatprep.mubr.msk.f32.mxu0 %vm146_vm1, %v415_v32  ;;  %v436_v31 = vrot.slane %v378_v27, 2  ;;  %v930_v32 = vld [vmem:[#allocation2 + $0x3e8] sm:$0xff] }
  0x7c   :  { %661 = vmatpush2.msra.mxu1 %v587_v33  ;;  %526 = vmatmul.mubr.f32.vlgmr.msra.gmra.mxu0 %v412_v38  ;;  %v726_v33 = vld [vmem:[#allocation2 + $0x320] sm:$0xff]  ;;  %v942_v27 = vld [vmem:[#allocation2 + $0x448] sm:$0xff] }
  0x7d   :  { %1699 = vmatprep.mubr.msk.f32.mxu1 %vm146_vm1, %v1888_v42  ;;  %813 = vmatprep.subr.mxu0 %v1828_v0  ;;  %v422_v42 = vrot.slane %v1966_v24, 2  ;;  %v929_v38 = vld [vmem:[#allocation2 + $0x3e0] sm:$0xff] }
  0x7e   :  { %1004 = vmatprep.subr.mxu1 %v1828_v0  ;;  %663 = vmatmul.mubr.f32.vlgmr.msra.gmra.mxu1 %v1898_v45  ;;  %v735_v45 = vld [vmem:[#allocation2 + $0x368] sm:$0xff] }
  0x7f   :  { %814 = vmatpush1.msra.mxu0 %v737_v41  ;;  %1005 = vmatpush1.msra.mxu1 %v940_v43  ;;  %v2158_v55 = vsel %vm409_vm2, %v2132_v39, %v422_v42  ;;  %v437_v41 = vsel %vm409_vm2, %v2209_v20, %v436_v31  ;;  %v725_v43 = vld [vmem:[#allocation2 + $0x318] sm:$0xff] }
  0x80   :  { %815 = vmatprep.subr.mxu0 %v1828_v0  ;;  %1006 = vmatprep.subr.mxu1 %v1828_v0 }
  0x81   :  { %1693 = vmatprep.mubr.msk.f32.mxu0 %vm146_vm1, %v419_v44  ;;  %816 = vmatpush1.msra.mxu0 %v736_v50  ;;  %v928_v44 = vld [vmem:[#allocation2 + $0x3d8] sm:$0xff]  ;;  %v724_v50 = vld [vmem:[#allocation2 + $0x310] sm:$0xff] }
  0x82   :  { %1007 = vmatpush1.msra.mxu1 %v939_v51  ;;  %531 = vmatmul.mubr.f32.gmra.mxu0 %v417_v52  ;;  %v927_v51 = vld [vmem:[#allocation2 + $0x3d0] sm:$0xff]  ;;  %v723_v52 = vld [vmem:[#allocation2 + $0x308] sm:$0xff] }
  0x83   :  { %817 = vmatprep.subr.mxu0 %v1828_v0  ;;  %1008 = vmatprep.subr.mxu1 %v1828_v0 }
  0x84   :  { %1700 = vmatprep.mubr.msk.f32.mxu1 %vm146_vm1, %v1944_v14  ;;  %818 = vmatpush1.msra.mxu0 %v735_v45  ;;  %v426_v14 = vrot.slane %v1991_v34, 2  ;;  %v722_v45 = vld [vmem:[#allocation2 + $0x300] sm:$0xff] }
  0x85   :  { %1009 = vmatpush1.msra.mxu1 %v938_v54  ;;  %819 = vmatprep.subr.mxu0 %v1828_v0  ;;  %v745_v54 = vld [vmem:[#allocation2 + $0x3b8] sm:$0xff] }
  0x86   :  { %668 = vmatmul.mubr.f32.gmra.mxu1 %v1949_v15  ;;  %1010 = vmatprep.subr.mxu1 %v1828_v0  ;;  %v2177_v15 = vsel %vm409_vm2, %v422_v42, %v426_v14  ;;  %v926_v42 = vld [vmem:[#allocation2 + $0x3c8] sm:$0xff] }
  0x87   :  { %1694 = vmatprep.mubr.msk.f32.mxu0 %vm146_vm1, %v2158_v55  ;;  %820 = vmatpush1.msra.mxu0 %v734_v60  ;;  %v948_v60 = vld [vmem:[#allocation2 + $0x478] sm:$0xff] }
  0x88   :  { %1011 = vmatpush1.msra.mxu1 %v937_v61  ;;  %536 = vmatmul.mubr.f32.gmra.mxu0 %v2163_v1  ;;  %v744_v61 = vld [vmem:[#allocation2 + $0x3b0] sm:$0xff] }
  0x89   :  { %821 = vmatprep.subr.mxu0 %v1828_v0  ;;  %1012 = vmatprep.subr.mxu1 %v1828_v0 }
  0x8a   :  { %1701 = vmatprep.mubr.msk.f32.mxu1 %vm146_vm1, %v1966_v24  ;;  %822 = vmatpush1.msra.mxu0 %v733_v2  ;;  %v731_v24 = vld [vmem:[#allocation2 + $0x348] sm:$0xff] }
  0x8b   :  { %1013 = vmatpush1.msra.mxu1 %v936_v5  ;;  %823 = vmatprep.subr.mxu0 %v1828_v0  ;;  %v743_v2 = vld [vmem:[#allocation2 + $0x3a8] sm:$0xff]  ;;  %v742_v5 = vld [vmem:[#allocation2 + $0x3a0] sm:$0xff] }
  0x8c   :  { %673 = vmatmul.mubr.f32.gmra.mxu1 %v1975_v26  ;;  %1014 = vmatprep.subr.mxu1 %v1828_v0  ;;  %v2195_v26 = vsel %vm409_vm2, %v426_v14, %v430_v10  ;;  %v947_v14 = vld [vmem:[#allocation2 + $0x470] sm:$0xff]  ;;  %v741_v10 = vld [vmem:[#allocation2 + $0x398] sm:$0xff] }
  0x8d   :  { %1695 = vmatprep.mubr.msk.f32.mxu0 %vm146_vm1, %v2177_v15  ;;  %824 = vmatpush1.msra.mxu0 %v732_v7  ;;  %v945_v7 = vld [vmem:[#allocation2 + $0x460] sm:$0xff] }
  0x8e   :  { %1015 = vmatpush1.msra.mxu1 %v935_v8  ;;  %541 = vmatmul.mubr.f32.gmra.mxu0 %v2181_v9  ;;  %v706_v8 = vld [vmem:[%s2715_s0 + $0x18] sm:$0xfe] }
  0x8f   :  { %825 = vmatprep.subr.mxu0 %v1828_v0  ;;  %1016 = vmatprep.subr.mxu1 %v1828_v0 }
  0x90   :  { %1702 = vmatprep.mubr.msk.f32.mxu1 %vm146_vm1, %v1991_v34  ;;  %826 = vmatpush1.msra.mxu0 %v731_v24  ;;  %v729_v34 = vld [vmem:[#allocation2 + $0x338] sm:$0xff] }
  0x91   :  { %1017 = vmatpush1.msra.mxu1 %v934_v12  ;;  %827 = vmatprep.subr.mxu0 %v1828_v0  ;;  %v944_v24 = vld [vmem:[#allocation2 + $0x458] sm:$0xff] }
  0x92   :  { %678 = vmatmul.mubr.f32.gmra.mxu1 %v2003_v36  ;;  %1018 = vmatprep.subr.mxu1 %v1828_v0  ;;  %v379_v36 = vld [vmem:[%s2715_s0 + $0x78] sm:$0x3]  ;;  %v921_v12 = vld [vmem:[%s2715_s0 + $0x18] sm:$0xfc] }
  0x93   :  { %1696 = vmatprep.mubr.msk.f32.mxu0 %vm146_vm1, %v2195_v26  ;;  %828 = vmatpush1.msra.mxu0 %v730_v13  ;;  %v740_v13 = vld [vmem:[#allocation2 + $0x390] sm:$0xff] }
  0x94   :  { %1019 = vmatpush1.msra.mxu1 %v933_v16  ;;  %546 = vmatmul.mubr.f32.gmra.mxu0 %v2199_v17  ;;  %v943_v16 = vld [vmem:[#allocation2 + $0x450] sm:$0xff] }
  0x95   :  { %829 = vmatprep.subr.mxu0 %v1828_v0  ;;  %1020 = vmatprep.subr.mxu1 %v1828_v0 }
  0x96   :  { %1703 = vmatprep.mubr.msk.f32.mxu1 %vm146_vm1, %v2021_v46  ;;  %830 = vmatpush1.msra.mxu0 %v729_v34  ;;  %v438_v46 = vrot.slane %v379_v36, 2  ;;  %v765_v34 = vrot.slane %v706_v8, 1  ;;  %v762_v36 = vrot.slane %v705_v11, 1  ;;  %v1280_v11 = vld [vmem:[#allocation2 + $0x558] sm:$0xff] }
  0x97   :  { %1021 = vmatpush1.msra.mxu1 %v932_v22  ;;  %831 = vmatprep.subr.mxu0 %v1828_v0  ;;  %v920_v22 = vld [vmem:[%s2715_s0 + $0x10] sm:$0xfc] }
  0x98   :  { %683 = vmatmul.mubr.f32.gmra.mxu1 %v2032_v48  ;;  %1022 = vmatprep.subr.mxu1 %v1828_v0  ;;  %v439_v48 = vsel %vm409_vm2, %v2204_v19, %v438_v46  ;;  %v953_v46 = vrot.slane %v920_v22, 2  ;;  %v767_v31 = vsel %vm108_vm0, %v765_v34, %v1954_v18  ;;  %v1129_v18 = vld [vmem:[#allocation2 + $0x4f8] sm:$0xff]  ;;  %v1115_v34 = vld [vmem:[#allocation2 + $0x488] sm:$0xff] }
  0x99   :  { %1697 = vmatprep.mubr.msk.f32.mxu0 %vm146_vm1, %v2221_v23  ;;  %832 = vmatpush1.msra.mxu0 %v728_v25  ;;  %v739_v25 = vld [vmem:[#allocation2 + $0x388] sm:$0xff] }
  0x9a   :  { %1023 = vmatpush1.msra.mxu1 %v931_v28  ;;  %551 = vmatmul.mubr.f32.gmra.mxu0 %v2229_v29  ;;  %v956_v28 = vrot.slane %v921_v12, 2  ;;  %v1278_v22 = vld [vmem:[#allocation2 + $0x548] sm:$0xff] }
  0x9b   :  { %833 = vmatprep.subr.mxu0 %v1828_v0  ;;  %1024 = vmatprep.subr.mxu1 %v1828_v0 }
  0x9c   :  { %1704 = vmatprep.mubr.msk.f32.mxu1 %vm146_vm1, %v2049_v56  ;;  %834 = vmatpush1.msra.mxu0 %v727_v30  ;;  %v2251_v56 = vld [vmem:[%s2715_s0 + $0x78] sm:$0xff]  ;;  %v738_v30 = vld [vmem:[#allocation2 + $0x380] sm:$0xff] }
  0x9d   :  { %1025 = vmatpush1.msra.mxu1 %v930_v32  ;;  %835 = vmatprep.subr.mxu0 %v1828_v0  ;;  %v941_v32 = vld [vmem:[#allocation2 + $0x440] sm:$0xff] }
  0x9e   :  { %688 = vmatmul.mubr.f32.gmra.mxu1 %v2060_v58  ;;  %1026 = vmatprep.subr.mxu1 %v1828_v0  ;;  %v2258_v58 = vld [vmem:[%s2715_s0 + $0x70] sm:$0xff] }
  0x9f   :  { %1698 = vmatprep.mubr.msk.f32.mxu0 %vm146_vm1, %v439_v48  ;;  %836 = vmatpush1.msra.mxu0 %v726_v33  ;;  %v764_v48 = vsel %vm108_vm0, %v762_v36, %v1959_v21  ;;  %v958_v33 = vsel %vm409_vm2, %v956_v28, %v2132_v39  ;;  %v1128_v21 = vld [vmem:[#allocation2 + $0x4f0] sm:$0xff]  ;;  %v1114_v36 = vld [vmem:[#allocation2 + $0x480] sm:$0xff]  ;;  %v1300_v28 = vld [vmem:[#allocation2 + $0x5f8] sm:$0xff] }
  0xa0   :  { %1027 = vmatpush1.msra.mxu1 %v929_v38  ;;  %556 = vmatmul.mubr.f32.gmra.mxu0 %v437_v41  ;;  %v955_v38 = vsel %vm409_vm2, %v953_v46, %v2136_v40  ;;  %v1292_v41 = vld [vmem:[#allocation2 + $0x5b8] sm:$0xff]  ;;  %v1291_v39 = vld [vmem:[#allocation2 + $0x5b0] sm:$0xff]  ;;  %v1127_v40 = vld [vmem:[#allocation2 + $0x4e8] sm:$0xff] }
  0xa1   :  { %837 = vmatprep.subr.mxu0 %v1828_v0  ;;  %1028 = vmatprep.subr.mxu1 %v1828_v0  ;;  %v1136_v46 = vld [vmem:[#allocation2 + $0x530] sm:$0xff] }
  0xa2   :  { %1705 = vmatprep.mubr.msk.f32.mxu1 %vm146_vm1, %v2251_v56  ;;  %838 = vmatpush1.msra.mxu0 %v725_v43  ;;  %v1290_v43 = vld [vmem:[#allocation2 + $0x5a8] sm:$0xff] }
  0xa3   :  { %1029 = vmatpush1.msra.mxu1 %v928_v44  ;;  %839 = vmatprep.subr.mxu0 %v1828_v0  ;;  %v1126_v44 = vld [vmem:[#allocation2 + $0x4e0] sm:$0xff] }
  0xa4   :  { %693 = vmatmul.mubr.f32.gmra.mxu1 %v2258_v58  ;;  %1030 = vmatprep.subr.mxu1 %v1828_v0 }
  0xa5   :  { %840 = vmatpush1.msra.mxu0 %v724_v50  ;;  %1031 = vmatpush1.msra.mxu1 %v927_v51  ;;  %v1289_v50 = vld [vmem:[#allocation2 + $0x5a0] sm:$0xff]  ;;  %v1284_v51 = vld [vmem:[#allocation2 + $0x578] sm:$0xff] }
  0xa6   :  { %841 = vmatprep.subr.mxu0 %v1828_v0  ;;  %1032 = vmatprep.subr.mxu1 %v1828_v0 }
  0xa7   :  { %842 = vmatpush1.msra.mxu0 %v723_v52  ;;  %1033 = vmatpush1.msra.mxu1 %v926_v42  ;;  %v1120_v52 = vld [vmem:[#allocation2 + $0x4b0] sm:$0xff]  ;;  %v719_v42 = vld [vmem:[%s2715_s0 + $0x80] sm:$0x1] }
  0xa8   :  { %843 = vmatprep.subr.mxu0 %v1828_v0  ;;  %1034 = vmatprep.subr.mxu1 %v1828_v0 }
  0xa9   :  { %844 = vmatpush1.msra.mxu0 %v722_v45  ;;  %1035 = vmatpush1.msra.mxu1 %v925_v53  ;;  %v1283_v45 = vld [vmem:[#allocation2 + $0x570] sm:$0xff] }
  0xaa   :  { %861 = vmatprep.subr.mxu0 %v1828_v0  ;;  %1052 = vmatprep.subr.mxu1 %v1828_v0 }
  0xab   :  { %862 = vmatpush2.msra.mxu0 %v745_v54  ;;  %1053 = vmatpush2.msra.mxu1 %v948_v60  ;;  %v923_v54 = vld [vmem:[%s2715_s0 + $0x88] sm:$0x3] }
  0xac   :  { %863 = vmatprep.subr.mxu0 %v1828_v0  ;;  %1054 = vmatprep.subr.mxu1 %v1828_v0 }
  0xad   :  { %864 = vmatpush2.msra.mxu0 %v744_v61  ;;  %1055 = vmatpush2.msra.mxu1 %v947_v14  ;;  %v788_v61 = vrot.slane %v719_v42, 1  ;;  %v1282_v14 = vld [vmem:[#allocation2 + $0x568] sm:$0xff]  ;;  %v2462_v42 = vld [vmem:[%s2715_s0 + $0x40] sm:$0xff] }
  0xae   :  { %865 = vmatprep.subr.mxu0 %v1828_v0  ;;  %1056 = vmatprep.subr.mxu1 %v1828_v0 }
  0xaf   :  { %866 = vmatpush2.msra.mxu0 %v743_v2  ;;  %1057 = vmatpush2.msra.mxu1 %v946_v3  ;;  %v981_v3 = vrot.slane %v923_v54, 2  ;;  %v2474_v54 = vld [vmem:[%s2715_s0 + $0x58] sm:$0xff] }
  0xb0   :  { %867 = vmatprep.subr.mxu0 %v1828_v0  ;;  %1058 = vmatprep.subr.mxu1 %v1828_v0 }
  0xb1   :  { %868 = vmatpush2.msra.mxu0 %v742_v5  ;;  %1059 = vmatpush2.msra.mxu1 %v945_v7  ;;  %v1118_v5 = vld [vmem:[#allocation2 + $0x4a0] sm:$0xff] }
  0xb2   :  { %869 = vmatprep.subr.mxu0 %v1828_v0  ;;  %1060 = vmatprep.subr.mxu1 %v1828_v0  ;;  %v1281_v7 = vld [vmem:[#allocation2 + $0x560] sm:$0xff] }
  0xb3   :  { %870 = vmatpush2.msra.mxu0 %v741_v10  ;;  %1061 = vmatpush2.msra.mxu1 %v944_v24  ;;  %v1117_v24 = vld [vmem:[#allocation2 + $0x498] sm:$0xff] }
  0xb4   :  { %871 = vmatprep.subr.mxu0 %v1828_v0  ;;  %1062 = vmatprep.subr.mxu1 %v1828_v0 }
  0xb5   :  { %872 = vmatpush2.msra.mxu0 %v740_v13  ;;  %1063 = vmatpush2.msra.mxu1 %v943_v16  ;;  %v1116_v13 = vld [vmem:[#allocation2 + $0x490] sm:$0xff] }
  0xb6   :  { %873 = vmatprep.subr.mxu0 %v1828_v0  ;;  %1064 = vmatprep.subr.mxu1 %v1828_v0  ;;  %v1279_v16 = vld [vmem:[#allocation2 + $0x550] sm:$0xff] }
  0xb7   :  { %874 = vmatpush2.msra.mxu0 %v739_v25  ;;  %1065 = vmatpush2.msra.mxu1 %v942_v27  ;;  %v1277_v25 = vld [vmem:[#allocation2 + $0x540] sm:$0xff]  ;;  %v1137_v27 = vld [vmem:[#allocation2 + $0x538] sm:$0xff] }
  0xb8   :  { %875 = vmatprep.subr.mxu0 %v1828_v0  ;;  %1066 = vmatprep.subr.mxu1 %v1828_v0 }
  0xb9   :  { %876 = vmatpush2.msra.mxu0 %v738_v30  ;;  %1706 = vmatprep.mubr.msk.f32.mxu0 %vm146_vm1, %v767_v31  ;;  %v1299_v30 = vld [vmem:[#allocation2 + $0x5f0] sm:$0xff]  ;;  %v1135_v31 = vld [vmem:[#allocation2 + $0x528] sm:$0xff] }
  0xba   :  { %1067 = vmatpush2.msra.mxu1 %v941_v32  ;;  %878 = vmatmul.mubr.f32.vlgmr.msra.gmra.mxu0 %v764_v48  ;;  %v1298_v32 = vld [vmem:[#allocation2 + $0x5e8] sm:$0xff]  ;;  %v1134_v48 = vld [vmem:[#allocation2 + $0x520] sm:$0xff] }
  0xbb   :  { %1713 = vmatprep.mubr.msk.f32.mxu1 %vm146_vm1, %v958_v33  ;;  %1153 = vmatprep.subr.mxu0 %v1828_v0  ;;  %v1297_v33 = vld [vmem:[#allocation2 + $0x5e0] sm:$0xff] }
  0xbc   :  { %1368 = vmatprep.subr.mxu1 %v1828_v0  ;;  %1069 = vmatmul.mubr.f32.vlgmr.msra.gmra.mxu1 %v955_v38  ;;  %v1133_v38 = vld [vmem:[#allocation2 + $0x518] sm:$0xff] }
  0xbd   :  { %1154 = vmatpush1.msra.mxu0 %v1129_v18  ;;  %1369 = vmatpush1.msra.mxu1 %v1292_v41  ;;  %v1296_v18 = vld [vmem:[#allocation2 + $0x5d8] sm:$0xff]  ;;  %v1132_v41 = vld [vmem:[#allocation2 + $0x510] sm:$0xff] }
  0xbe   :  { %1155 = vmatprep.subr.mxu0 %v1828_v0  ;;  %1370 = vmatprep.subr.mxu1 %v1828_v0 }
  0xbf   :  { %1707 = vmatprep.mubr.msk.f32.mxu0 %vm146_vm1, %v1998_v35  ;;  %1156 = vmatpush1.msra.mxu0 %v1128_v21  ;;  %v1125_v35 = vld [vmem:[#allocation2 + $0x4d8] sm:$0xff]  ;;  %v1261_v21 = vld [vmem:[%s2715_s0 + $0x28] sm:$0xfe] }
  0xc0   :  { %1371 = vmatpush1.msra.mxu1 %v1291_v39  ;;  %883 = vmatmul.mubr.f32.gmra.mxu0 %v2009_v37  ;;  %v1288_v37 = vld [vmem:[#allocation2 + $0x598] sm:$0xff] }
  0xc1   :  { %1157 = vmatprep.subr.mxu0 %v1828_v0  ;;  %1372 = vmatprep.subr.mxu1 %v1828_v0  ;;  %v2425_v39 = vld [vmem:[%s2715_s0 + $0x38] sm:$0xff] }
  0xc2   :  { %1714 = vmatprep.mubr.msk.f32.mxu1 %vm146_vm1, %v2158_v55  ;;  %1158 = vmatpush1.msra.mxu0 %v1127_v40  ;;  %v1124_v55 = vld [vmem:[#allocation2 + $0x4d0] sm:$0xff] }
  0xc3   :  { %1373 = vmatpush1.msra.mxu1 %v1290_v43  ;;  %1159 = vmatprep.subr.mxu0 %v1828_v0  ;;  %v1295_v40 = vld [vmem:[#allocation2 + $0x5d0] sm:$0xff]  ;;  %v1260_v43 = vld [vmem:[%s2715_s0 + $0x20] sm:$0xfe] }
  0xc4   :  { %1074 = vmatmul.mubr.f32.gmra.mxu1 %v2163_v1  ;;  %1374 = vmatprep.subr.mxu1 %v1828_v0  ;;  %v1287_v1 = vld [vmem:[#allocation2 + $0x590] sm:$0xff] }
  0xc5   :  { %1708 = vmatprep.mubr.msk.f32.mxu0 %vm146_vm1, %v2027_v47  ;;  %1160 = vmatpush1.msra.mxu0 %v1126_v44  ;;  %v1123_v47 = vld [vmem:[#allocation2 + $0x4c8] sm:$0xff]  ;;  %v2435_v44 = vld [vmem:[%s2715_s0 + $0x30] sm:$0xff] }
  0xc6   :  { %1375 = vmatpush1.msra.mxu1 %v1289_v50  ;;  %888 = vmatmul.mubr.f32.gmra.mxu0 %v2037_v49  ;;  %v1286_v49 = vld [vmem:[#allocation2 + $0x588] sm:$0xff] }
  0xc7   :  { %1161 = vmatprep.subr.mxu0 %v1828_v0  ;;  %1376 = vmatprep.subr.mxu1 %v1828_v0  ;;  %v1131_v50 = vld [vmem:[#allocation2 + $0x508] sm:$0xff] }
  0xc8   :  { %1715 = vmatprep.mubr.msk.f32.mxu1 %vm146_vm1, %v2177_v15  ;;  %1162 = vmatpush1.msra.mxu0 %v1125_v35  ;;  %v1122_v15 = vld [vmem:[#allocation2 + $0x4c0] sm:$0xff]  ;;  %v1294_v35 = vld [vmem:[#allocation2 + $0x5c8] sm:$0xff] }
  0xc9   :  { %1377 = vmatpush1.msra.mxu1 %v1288_v37  ;;  %1163 = vmatprep.subr.mxu0 %v1828_v0  ;;  %v1320_v37 = vrot.slane %v1261_v21, 1  ;;  %v1487_v21 = vld [vmem:[#allocation2 + $0x638] sm:$0xff] }
  0xca   :  { %1079 = vmatmul.mubr.f32.gmra.mxu1 %v2181_v9  ;;  %1378 = vmatprep.subr.mxu1 %v1828_v0  ;;  %v1285_v9 = vld [vmem:[#allocation2 + $0x580] sm:$0xff] }
  0xcb   :  { %1709 = vmatprep.mubr.msk.f32.mxu0 %vm146_vm1, %v2055_v57  ;;  %1164 = vmatpush1.msra.mxu0 %v1124_v55  ;;  %v2342_v57 = vrot.slane %v2251_v56, 1  ;;  %v1321_v55 = vrot.slane %v2425_v39, 1 }
  0xcc   :  { %1379 = vmatpush1.msra.mxu1 %v1287_v1  ;;  %893 = vmatmul.mubr.f32.gmra.mxu0 %v2065_v59  ;;  %v1121_v59 = vld [vmem:[#allocation2 + $0x4b8] sm:$0xff]  ;;  %v1317_v1 = vrot.slane %v1260_v43, 1  ;;  %v2556_v43 = vld [vmem:[%s2715_s0 + $0x80] sm:$0xff] }
  0xcd   :  { %1165 = vmatprep.subr.mxu0 %v1828_v0  ;;  %1380 = vmatprep.subr.mxu1 %v1828_v0 }
  0xce   :  { %1716 = vmatprep.mubr.msk.f32.mxu1 %vm146_vm1, %v2195_v26  ;;  %1166 = vmatpush1.msra.mxu0 %v1123_v47  ;;  %v2347_v26 = vrot.slane %v2258_v58, 1  ;;  %v1318_v47 = vrot.slane %v2435_v44, 1 }
  0xcf   :  { %1381 = vmatpush1.msra.mxu1 %v1286_v49  ;;  %1167 = vmatprep.subr.mxu0 %v1828_v0  ;;  %v1130_v49 = vld [vmem:[#allocation2 + $0x500] sm:$0xff] }
  0xd0   :  { %1084 = vmatmul.mubr.f32.gmra.mxu1 %v2199_v17  ;;  %1382 = vmatprep.subr.mxu1 %v1828_v0  ;;  %v2353_v17 = vrot.slane %v2251_v56, 2  ;;  %v785_v53 = vsel %vm108_vm0, %v2074_v63, %v2347_v26  ;;  %v1119_v63 = vld [vmem:[#allocation2 + $0x4a8] sm:$0xff]  ;;  %v789_v8 = vsel %vm108_vm0, %v2347_v26, %v788_v61 }
  0xd1   :  { %1710 = vmatprep.mubr.msk.f32.mxu0 %vm146_vm1, %v2086_v4  ;;  %1168 = vmatpush1.msra.mxu0 %v1122_v15  ;;  %v720_v4 = vld [vmem:[%s2715_s0 + $0x88] sm:$0x1]  ;;  %v1293_v15 = vld [vmem:[#allocation2 + $0x5c0] sm:$0xff] }
  0xd2   :  { %1383 = vmatpush1.msra.mxu1 %v1285_v9  ;;  %898 = vmatmul.mubr.f32.gmra.mxu0 %v2095_v6  ;;  %v787_v6 = vsel %vm108_vm0, %v2068_v62, %v2342_v57  ;;  %v790_v62 = vrot.slane %v720_v4, 1  ;;  %v978_v60 = vsel %vm409_vm2, %v2204_v19, %v2353_v17  ;;  %v1322_v9 = vsel %vm108_vm0, %v1320_v37, %v1321_v55  ;;  %v1493_v61 = vld [vmem:[#allocation2 + $0x668] sm:$0xff]  ;;  %v1486_v37 = vld [vmem:[#allocation2 + $0x630] sm:$0xff] }
  0xd3   :  { %1169 = vmatprep.subr.mxu0 %v1828_v0  ;;  %1384 = vmatprep.subr.mxu1 %v1828_v0  ;;  %v1319_v4 = vsel %vm108_vm0, %v1317_v1, %v1318_v47  ;;  %v1275_v1 = vld [vmem:[%s2715_s0 + $0x98] sm:$0x1] }
  0xd4   :  { %1717 = vmatprep.mubr.msk.f32.mxu1 %vm146_vm1, %v2221_v23  ;;  %1170 = vmatpush1.msra.mxu0 %v1121_v59  ;;  %v2371_v23 = vrot.slane %v2258_v58, 2  ;;  %v791_v19 = vsel %vm108_vm0, %v2342_v57, %v790_v62  ;;  %v2449_v59 = vld [vmem:[%s2715_s0 + $0x48] sm:$0xff]  ;;  %v1323_v62 = vrot.slane %v2462_v42, 1 }
  0xd5   :  { %1385 = vmatpush1.msra.mxu1 %v1284_v51  ;;  %1171 = vmatprep.subr.mxu0 %v1828_v0  ;;  %v1793_v51 = vld [vmem:[%s2715_s0 + $0x28] sm:$0xff] }
  0xd6   :  { %1089 = vmatmul.mubr.f32.gmra.mxu1 %v2229_v29  ;;  %1386 = vmatprep.subr.mxu1 %v1828_v0  ;;  %v922_v29 = vld [vmem:[%s2715_s0 + $0x80] sm:$0x3]  ;;  %v976_v2 = vsel %vm409_vm2, %v2209_v20, %v2371_v23  ;;  %v982_v20 = vsel %vm409_vm2, %v2353_v17, %v981_v3  ;;  %v1324_v3 = vsel %vm108_vm0, %v1318_v47, %v1323_v62 }
  0xd7   :  { %1711 = vmatprep.mubr.msk.f32.mxu0 %vm146_vm1, %v787_v6  ;;  %1172 = vmatpush1.msra.mxu0 %v1120_v52  ;;  %v979_v10 = vrot.slane %v922_v29, 2  ;;  %v1794_v6 = vld [vmem:[%s2715_s0 + $0x20] sm:$0xff]  ;;  %v1495_v52 = vld [vmem:[#allocation2 + $0x678] sm:$0xff]  ;;  %v2487_v29 = vld [vmem:[%s2715_s0 + $0x50] sm:$0xff] }
  0xd8   :  { %1387 = vmatpush1.msra.mxu1 %v1283_v45  ;;  %903 = vmatmul.mubr.f32.gmra.mxu0 %v785_v53  ;;  %v1325_v45 = vrot.slane %v2449_v59, 1  ;;  %v1494_v53 = vld [vmem:[#allocation2 + $0x670] sm:$0xff] }
  0xd9   :  { %1173 = vmatprep.subr.mxu0 %v1828_v0  ;;  %1388 = vmatprep.subr.mxu1 %v1828_v0  ;;  %v980_v12 = vsel %vm409_vm2, %v2371_v23, %v979_v10  ;;  %v1327_v10 = vrot.slane %v2487_v29, 1 }
  0xda   :  { %1718 = vmatprep.mubr.msk.f32.mxu1 %vm146_vm1, %v978_v60  ;;  %1174 = vmatpush1.msra.mxu0 %v1119_v63  ;;  %v1795_v60 = vld [vmem:[%s2715_s0 + $0x38] sm:$0xff]  ;;  %v1326_v63 = vsel %vm108_vm0, %v1321_v55, %v1325_v45  ;;  %v1339_v55 = vrot.slane %v2556_v43, 1 }
  0xdb   :  { %1389 = vmatpush1.msra.mxu1 %v1282_v14  ;;  %1175 = vmatprep.subr.mxu0 %v1828_v0  ;;  %v1796_v14 = vld [vmem:[%s2715_s0 + $0x30] sm:$0xff] }
  0xdc   :  { %1094 = vmatmul.mubr.f32.gmra.mxu1 %v976_v2  ;;  %1390 = vmatprep.subr.mxu1 %v1828_v0 }
  0xdd   :  { %1712 = vmatprep.mubr.msk.f32.mxu0 %vm146_vm1, %v791_v19  ;;  %1176 = vmatpush1.msra.mxu0 %v1118_v5  ;;  %v1329_v19 = vrot.slane %v2474_v54, 1  ;;  %v1492_v5 = vld [vmem:[#allocation2 + $0x660] sm:$0xff] }
  0xde   :  { %1391 = vmatpush1.msra.mxu1 %v1281_v7  ;;  %908 = vmatmul.mubr.f32.gmra.mxu0 %v789_v8 }
  0xdf   :  { %1177 = vmatprep.subr.mxu0 %v1828_v0  ;;  %1392 = vmatprep.subr.mxu1 %v1828_v0 }
  0xe0   :  { %1719 = vmatprep.mubr.msk.f32.mxu1 %vm146_vm1, %v982_v20  ;;  %1178 = vmatpush1.msra.mxu0 %v1117_v24  ;;  %v2502_v24 = vld [vmem:[%s2715_s0 + $0x68] sm:$0xff] }
  0xe1   :  { %1393 = vmatpush1.msra.mxu1 %v1280_v11  ;;  %1179 = vmatprep.subr.mxu0 %v1828_v0 }
  0xe2   :  { %1099 = vmatmul.mubr.f32.gmra.mxu1 %v980_v12  ;;  %1394 = vmatprep.subr.mxu1 %v1828_v0  ;;  %v1797_v12 = vld [vmem:[%s2715_s0 + $0x48] sm:$0xff] }
  0xe3   :  { %1180 = vmatpush1.msra.mxu0 %v1116_v13  ;;  %1395 = vmatpush1.msra.mxu1 %v1279_v16  ;;  %v1330_v13 = vsel %vm108_vm0, %v1325_v45, %v1329_v19  ;;  %v1491_v16 = vld [vmem:[#allocation2 + $0x658] sm:$0xff] }
  0xe4   :  { %1181 = vmatprep.subr.mxu0 %v1828_v0  ;;  %1396 = vmatprep.subr.mxu1 %v1828_v0 }
  0xe5   :  { %1182 = vmatpush1.msra.mxu0 %v1115_v34  ;;  %1397 = vmatpush1.msra.mxu1 %v1278_v22  ;;  %v1798_v34 = vld [vmem:[%s2715_s0 + $0x40] sm:$0xff] }
  0xe6   :  { %1183 = vmatprep.subr.mxu0 %v1828_v0  ;;  %1398 = vmatprep.subr.mxu1 %v1828_v0  ;;  %v2515_v22 = vld [vmem:[%s2715_s0 + $0x60] sm:$0xff] }
  0xe7   :  { %1184 = vmatpush1.msra.mxu0 %v1114_v36  ;;  %1399 = vmatpush1.msra.mxu1 %v1277_v25  ;;  %v1328_v36 = vsel %vm108_vm0, %v1323_v62, %v1327_v10  ;;  %v1333_v25 = vrot.slane %v2502_v24, 1 }
  0xe8   :  { %1201 = vmatprep.subr.mxu0 %v1828_v0  ;;  %1416 = vmatprep.subr.mxu1 %v1828_v0 }
  0xe9   :  { %1202 = vmatpush2.msra.mxu0 %v1137_v27  ;;  %1417 = vmatpush2.msra.mxu1 %v1300_v28  ;;  %v1490_v27 = vld [vmem:[#allocation2 + $0x650] sm:$0xff]  ;;  %v1331_v28 = vrot.slane %v2515_v22, 1 }
  0xea   :  { %1203 = vmatprep.subr.mxu0 %v1828_v0  ;;  %1418 = vmatprep.subr.mxu1 %v1828_v0 }
  0xeb   :  { %1204 = vmatpush2.msra.mxu0 %v1136_v46  ;;  %1419 = vmatpush2.msra.mxu1 %v1299_v30  ;;  %v1799_v46 = vld [vmem:[%s2715_s0 + $0x58] sm:$0xff]  ;;  %v1334_v30 = vsel %vm108_vm0, %v1329_v19, %v1333_v25  ;;  %v1480_v19 = vld [vmem:[#allocation2 + $0x600] sm:$0xff] }
  0xec   :  { %1205 = vmatprep.subr.mxu0 %v1828_v0  ;;  %1420 = vmatprep.subr.mxu1 %v1828_v0 }
  0xed   :  { %1206 = vmatpush2.msra.mxu0 %v1135_v31  ;;  %1421 = vmatpush2.msra.mxu1 %v1298_v32  ;;  %v1489_v31 = vld [vmem:[#allocation2 + $0x648] sm:$0xff]  ;;  %v1800_v32 = vld [vmem:[%s2715_s0 + $0x50] sm:$0xff] }
  0xee   :  { %1207 = vmatprep.subr.mxu0 %v1828_v0  ;;  %1422 = vmatprep.subr.mxu1 %v1828_v0 }
  0xef   :  { %1208 = vmatpush2.msra.mxu0 %v1134_v48  ;;  %1423 = vmatpush2.msra.mxu1 %v1297_v33  ;;  %v1332_v48 = vsel %vm108_vm0, %v1327_v10, %v1331_v28  ;;  %v1488_v33 = vld [vmem:[#allocation2 + $0x640] sm:$0xff] }
  0xf0   :  { %1209 = vmatprep.subr.mxu0 %v1828_v0  ;;  %1424 = vmatprep.subr.mxu1 %v1828_v0 }
  0xf1   :  { %1210 = vmatpush2.msra.mxu0 %v1133_v38  ;;  %1425 = vmatpush2.msra.mxu1 %v1296_v18  ;;  %v2542_v38 = vld [vmem:[%s2715_s0 + $0x88] sm:$0xff] }
  0xf2   :  { %1211 = vmatprep.subr.mxu0 %v1828_v0  ;;  %1426 = vmatprep.subr.mxu1 %v1828_v0  ;;  %v1801_v18 = vld [vmem:[%s2715_s0 + $0x68] sm:$0xff] }
  0xf3   :  { %1212 = vmatpush2.msra.mxu0 %v1132_v41  ;;  %1427 = vmatpush2.msra.mxu1 %v1295_v40  ;;  %v1338_v41 = vsel %vm108_vm0, %v1333_v25, %v2342_v57  ;;  %v1802_v40 = vld [vmem:[%s2715_s0 + $0x60] sm:$0xff] }
  0xf4   :  { %1213 = vmatprep.subr.mxu0 %v1828_v0  ;;  %1428 = vmatprep.subr.mxu1 %v1828_v0  ;;  %v1500_v25 = vld [vmem:[#allocation2 + $0x6a0] sm:$0xff] }
  0xf5   :  { %1214 = vmatpush2.msra.mxu0 %v1131_v50  ;;  %1429 = vmatpush2.msra.mxu1 %v1294_v35  ;;  %v1336_v50 = vsel %vm108_vm0, %v1331_v28, %v2347_v26  ;;  %v1341_v35 = vrot.slane %v2542_v38, 1  ;;  %v1499_v28 = vld [vmem:[#allocation2 + $0x698] sm:$0xff] }
  0xf6   :  { %1215 = vmatprep.subr.mxu0 %v1828_v0  ;;  %1430 = vmatprep.subr.mxu1 %v1828_v0 }
  0xf7   :  { %1216 = vmatpush2.msra.mxu0 %v1130_v49  ;;  %1720 = vmatprep.mubr.msk.f32.mxu0 %vm146_vm1, %v1793_v51  ;;  %v1342_v47 = vsel %vm108_vm0, %v2342_v57, %v1341_v35  ;;  %v1485_v49 = vld [vmem:[#allocation2 + $0x628] sm:$0xff]  ;;  %v1484_v57 = vld [vmem:[#allocation2 + $0x620] sm:$0xff] }
  0xf8   :  { %1431 = vmatpush2.msra.mxu1 %v1293_v15  ;;  %1218 = vmatmul.mubr.f32.vlgmr.msra.gmra.mxu0 %v1794_v6  ;;  %v1274_v15 = vld [vmem:[%s2715_s0 + $0x90] sm:$0x1] }
  0xf9   :  { %1727 = vmatprep.mubr.msk.f32.mxu1 %vm146_vm1, %v1322_v9  ;;  %1559 = vmatprep.subr.mxu0 %v1828_v0  ;;  %v1340_v9 = vsel %vm108_vm0, %v2347_v26, %v1339_v55 }
  0xfa   :  { %1741 = vmatprep.subr.mxu1 %v1828_v0  ;;  %1433 = vmatmul.mubr.f32.vlgmr.msra.gmra.mxu1 %v1319_v4 }
  0xfb   :  { %1560 = vmatpush1.msra.mxu0 %v1495_v52  ;;  %1765 = vmatpush1.msra.mxu1 %v1495_v52  ;;  %v1483_v52 = vld [vmem:[#allocation2 + $0x618] sm:$0xff] }
  0xfc   :  { %1561 = vmatprep.subr.mxu0 %v1828_v0  ;;  %1742 = vmatprep.subr.mxu1 %v1828_v0 }
  0xfd   :  { %1721 = vmatprep.mubr.msk.f32.mxu0 %vm146_vm1, %v1795_v60  ;;  %1562 = vmatpush1.msra.mxu0 %v1494_v53 }
  0xfe   :  { %1766 = vmatpush1.msra.mxu1 %v1494_v53  ;;  %1223 = vmatmul.mubr.f32.gmra.mxu0 %v1796_v14  ;;  %v227_v2 = vpop.f32.mrf.mxu0  ;;  %v1481_v14 = vld [vmem:[#allocation2 + $0x608] sm:$0xff] }
  0xff   :  { %1563 = vmatprep.subr.mxu0 %v1828_v0  ;;  %1743 = vmatprep.subr.mxu1 %v1828_v0 }
 0x100   :  { %1728 = vmatprep.mubr.msk.f32.mxu1 %vm146_vm1, %v1326_v63  ;;  %1564 = vmatpush1.msra.mxu0 %v1493_v61  ;;  %v342_v7 = vpop.f32.mrf.mxu1  ;;  %v229_v8 = vpop.f32.mrf.mxu0  ;;  %v1482_v63 = vld [vmem:[#allocation2 + $0x610] sm:$0xff] }
 0x101   :  { %1767 = vmatpush1.msra.mxu1 %v1493_v61  ;;  %1565 = vmatprep.subr.mxu0 %v1828_v0  ;;  %v2496_v20 = vadd.f32 %v342_v7, %v227_v2  ;;  %v1503_v8 = vld [vmem:[#allocation2 + $0x6b8] sm:$0xff] }
 0x102   :  { %1438 = vmatmul.mubr.f32.gmra.mxu1 %v1324_v3  ;;  %1744 = vmatprep.subr.mxu1 %v1828_v0  ;;  %v344_v11 = vpop.f32.mrf.mxu1 }
 0x103   :  { %1722 = vmatprep.mubr.msk.f32.mxu0 %vm146_vm1, %v1797_v12  ;;  %1566 = vmatpush1.msra.mxu0 %v1492_v5  ;;  %v1502_v11 = vld [vmem:[#allocation2 + $0x6b0] sm:$0xff] }
 0x104   :  { %1768 = vmatpush1.msra.mxu1 %v1492_v5  ;;  %1228 = vmatmul.mubr.f32.gmra.mxu0 %v1798_v34 }
 0x105   :  { %1567 = vmatprep.subr.mxu0 %v1828_v0  ;;  %1745 = vmatprep.subr.mxu1 %v1828_v0 }
 0x106   :  { %1729 = vmatprep.mubr.msk.f32.mxu1 %vm146_vm1, %v1330_v13  ;;  %1568 = vmatpush1.msra.mxu0 %v1491_v16 }
 0x107   :  { %1769 = vmatpush1.msra.mxu1 %v1491_v16  ;;  %1569 = vmatprep.subr.mxu0 %v1828_v0  ;;  %v1501_v16 = vld [vmem:[#allocation2 + $0x6a8] sm:$0xff] }
 0x108   :  { %1443 = vmatmul.mubr.f32.gmra.mxu1 %v1328_v36  ;;  %1746 = vmatprep.subr.mxu1 %v1828_v0 }
 0x109   :  { %1723 = vmatprep.mubr.msk.f32.mxu0 %vm146_vm1, %v1799_v46  ;;  %1570 = vmatpush1.msra.mxu0 %v1490_v27  ;;  %v1476_v46 = vld [vmem:[%s2715_s0 + $0x28] sm:$0xfc] }
 0x10a   :  { %1770 = vmatpush1.msra.mxu1 %v1490_v27  ;;  %1233 = vmatmul.mubr.f32.gmra.mxu0 %v1800_v32 }
 0x10b   :  { %1571 = vmatprep.subr.mxu0 %v1828_v0  ;;  %1747 = vmatprep.subr.mxu1 %v1828_v0 }
 0x10c   :  { %1730 = vmatprep.mubr.msk.f32.mxu1 %vm146_vm1, %v1334_v30  ;;  %1572 = vmatpush1.msra.mxu0 %v1489_v31 }
 0x10d   :  { %1771 = vmatpush1.msra.mxu1 %v1489_v31  ;;  %1573 = vmatprep.subr.mxu0 %v1828_v0  ;;  %v1475_v31 = vld [vmem:[%s2715_s0 + $0x20] sm:$0xfc] }
 0x10e   :  { %1448 = vmatmul.mubr.f32.gmra.mxu1 %v1332_v48  ;;  %1748 = vmatprep.subr.mxu1 %v1828_v0  ;;  %v1498_v48 = vld [vmem:[#allocation2 + $0x690] sm:$0xff] }
 0x10f   :  { %1724 = vmatprep.mubr.msk.f32.mxu0 %vm146_vm1, %v1801_v18  ;;  %1574 = vmatpush1.msra.mxu0 %v1488_v33  ;;  %v1511_v18 = vrot.slane %v1476_v46, 2 }
 0x110   :  { %1772 = vmatpush1.msra.mxu1 %v1488_v33  ;;  %1238 = vmatmul.mubr.f32.gmra.mxu0 %v1802_v40 }
 0x111   :  { %1575 = vmatprep.subr.mxu0 %v1828_v0  ;;  %1749 = vmatprep.subr.mxu1 %v1828_v0 }
 0x112   :  { %1731 = vmatprep.mubr.msk.f32.mxu1 %vm146_vm1, %v1338_v41  ;;  %1576 = vmatpush1.msra.mxu0 %v1487_v21  ;;  %v1512_v41 = vrot.slane %v2425_v39, 2 }
 0x113   :  { %1773 = vmatpush1.msra.mxu1 %v1487_v21  ;;  %1577 = vmatprep.subr.mxu0 %v1828_v0  ;;  %v1524_v21 = vrot.slane %v2502_v24, 2  ;;  %v1496_v24 = vld [vmem:[#allocation2 + $0x680] sm:$0xff] }
 0x114   :  { %1453 = vmatmul.mubr.f32.gmra.mxu1 %v1336_v50  ;;  %1750 = vmatprep.subr.mxu1 %v1828_v0  ;;  %v1522_v50 = vrot.slane %v2515_v22, 2 }
 0x115   :  { %1725 = vmatprep.mubr.msk.f32.mxu0 %vm146_vm1, %v2251_v56  ;;  %1578 = vmatpush1.msra.mxu0 %v1486_v37  ;;  %v1345_v56 = vrot.slane %v1275_v1, 1  ;;  %v1516_v1 = vrot.slane %v2449_v59, 2  ;;  %v1529_v59 = vsel %vm409_vm2, %v1524_v21, %v2353_v17 }
 0x116   :  { %1774 = vmatpush1.msra.mxu1 %v1486_v37  ;;  %1243 = vmatmul.mubr.f32.gmra.mxu0 %v2258_v58  ;;  %v1343_v58 = vrot.slane %v1274_v15, 1  ;;  %v1508_v37 = vrot.slane %v1475_v31, 2 }
 0x117   :  { %1579 = vmatprep.subr.mxu0 %v1828_v0  ;;  %1751 = vmatprep.subr.mxu1 %v1828_v0  ;;  %v232_v51 = vpop.f32.mrf.mxu0  ;;  %v1346_v26 = vsel %vm108_vm0, %v1341_v35, %v1345_v56  ;;  %v1497_v35 = vld [vmem:[#allocation2 + $0x688] sm:$0xff]  ;;  %v1527_v56 = vsel %vm409_vm2, %v1522_v50, %v2371_v23 }
 0x118   :  { %1732 = vmatprep.mubr.msk.f32.mxu1 %vm146_vm1, %v1342_v47  ;;  %1580 = vmatpush1.msra.mxu0 %v1485_v49  ;;  %v1344_v62 = vsel %vm108_vm0, %v1339_v55, %v1343_v58  ;;  %v1509_v55 = vrot.slane %v2435_v44, 2  ;;  %v1532_v47 = vrot.slane %v2542_v38, 2  ;;  %v1513_v44 = vsel %vm409_vm2, %v1511_v18, %v1512_v41 }
 0x119   :  { %1775 = vmatpush1.msra.mxu1 %v1485_v49  ;;  %1581 = vmatprep.subr.mxu0 %v1828_v0  ;;  %v234_v4 = vpop.f32.mrf.mxu0  ;;  %v1478_v49 = vld [vmem:[%s2715_s0 + $0x98] sm:$0x3] }
 0x11a   :  { %1458 = vmatmul.mubr.f32.gmra.mxu1 %v1340_v9  ;;  %1752 = vmatprep.subr.mxu1 %v1828_v0  ;;  %v347_v6 = vpop.f32.mrf.mxu1  ;;  %v1517_v4 = vsel %vm409_vm2, %v1512_v41, %v1516_v1 }
 0x11b   :  { %1726 = vmatprep.mubr.msk.f32.mxu0 %vm146_vm1, %v2542_v38  ;;  %1582 = vmatpush1.msra.mxu0 %v1484_v57  ;;  %v2588_v45 = vadd.f32 %v347_v6, %v232_v51  ;;  %v1510_v38 = vsel %vm409_vm2, %v1508_v37, %v1509_v55  ;;  %v1514_v51 = vrot.slane %v2462_v42, 2  ;;  %v1533_v6 = vsel %vm409_vm2, %v2353_v17, %v1532_v47 }
 0x11c   :  { %1776 = vmatpush1.msra.mxu1 %v1484_v57  ;;  %1248 = vmatmul.mubr.f32.gmra.mxu0 %v2556_v43  ;;  %v349_v53 = vpop.f32.mrf.mxu1  ;;  %v1530_v57 = vrot.slane %v2556_v43, 2  ;;  %v1518_v43 = vrot.slane %v2487_v29, 2 }
 0x11d   :  { %1583 = vmatprep.subr.mxu0 %v1828_v0  ;;  %1753 = vmatprep.subr.mxu1 %v1828_v0  ;;  %v237_v60 = vpop.f32.mrf.mxu0  ;;  %v1515_v17 = vsel %vm409_vm2, %v1509_v55, %v1514_v51 }
 0x11e   :  { %1733 = vmatprep.mubr.msk.f32.mxu1 %vm146_vm1, %v1346_v26  ;;  %1584 = vmatpush1.msra.mxu0 %v1483_v52  ;;  %v1536_v26 = vrot.slane %v1478_v49, 2 }
 0x11f   :  { %1777 = vmatpush1.msra.mxu1 %v1483_v52  ;;  %1585 = vmatprep.subr.mxu0 %v1828_v0  ;;  %v239_v61 = vpop.f32.mrf.mxu0  ;;  %v1477_v52 = vld [vmem:[%s2715_s0 + $0x90] sm:$0x3] }
 0x120   :  { %1463 = vmatmul.mubr.f32.gmra.mxu1 %v1344_v62  ;;  %1754 = vmatprep.subr.mxu1 %v1828_v0  ;;  %v352_v2 = vpop.f32.mrf.mxu1  ;;  %v1534_v62 = vrot.slane %v1477_v52, 2  ;;  %v1537_v61 = vsel %vm409_vm2, %v1532_v47, %v1536_v26 }
 0x121   :  { %1586 = vmatpush1.msra.mxu0 %v1482_v63  ;;  %1778 = vmatpush1.msra.mxu1 %v1482_v63  ;;  %v2597_v3 = vadd.f32 %v352_v2, %v237_v60 }
 0x122   :  { %1587 = vmatprep.subr.mxu0 %v1828_v0  ;;  %1755 = vmatprep.subr.mxu1 %v1828_v0  ;;  %v354_v5 = vpop.f32.mrf.mxu1 }
 0x123   :  { %1588 = vmatpush1.msra.mxu0 %v1481_v14  ;;  %1779 = vmatpush1.msra.mxu1 %v1481_v14  ;;  %v242_v7 = vpop.f32.mrf.mxu0 }
 0x124   :  { %1589 = vmatprep.subr.mxu0 %v1828_v0  ;;  %1756 = vmatprep.subr.mxu1 %v1828_v0 }
 0x125   :  { %1590 = vmatpush1.msra.mxu0 %v1480_v19  ;;  %1780 = vmatpush1.msra.mxu1 %v1480_v19  ;;  %v244_v10 = vpop.f32.mrf.mxu0  ;;  %v1519_v19 = vsel %vm409_vm2, %v1514_v51, %v1518_v43 }
 0x126   :  { %1607 = vmatprep.subr.mxu0 %v1828_v0  ;;  %1757 = vmatprep.subr.mxu1 %v1828_v0  ;;  %v357_v12 = vpop.f32.mrf.mxu1 }
 0x127   :  { %1608 = vmatpush2.msra.mxu0 %v1503_v8  ;;  %1781 = vmatpush2.msra.mxu1 %v1503_v8  ;;  %v2605_v13 = vadd.f32 %v357_v12, %v242_v7  ;;  %v1523_v12 = vsel %vm409_vm2, %v1518_v43, %v1522_v50 }
 0x128   :  { %1609 = vmatprep.subr.mxu0 %v1828_v0  ;;  %1758 = vmatprep.subr.mxu1 %v1828_v0  ;;  %v359_v34 = vpop.f32.mrf.mxu1 }
 0x129   :  { %1610 = vmatpush2.msra.mxu0 %v1502_v11  ;;  %1782 = vmatpush2.msra.mxu1 %v1502_v11  ;;  %v247_v36 = vpop.f32.mrf.mxu0 }
 0x12a   :  { %1611 = vmatprep.subr.mxu0 %v1828_v0  ;;  %1759 = vmatprep.subr.mxu1 %v1828_v0 }
 0x12b   :  { %1612 = vmatpush2.msra.mxu0 %v1501_v16  ;;  %1783 = vmatpush2.msra.mxu1 %v1501_v16  ;;  %v249_v27 = vpop.f32.mrf.mxu0 }
 0x12c   :  { %1613 = vmatprep.subr.mxu0 %v1828_v0  ;;  %1760 = vmatprep.subr.mxu1 %v1828_v0  ;;  %v362_v30 = vpop.f32.mrf.mxu1 }
 0x12d   :  { %1614 = vmatpush2.msra.mxu0 %v1500_v25  ;;  %1784 = vmatpush2.msra.mxu1 %v1500_v25  ;;  %v2619_v32 = vadd.f32 %v362_v30, %v247_v36 }
 0x12e   :  { %1615 = vmatprep.subr.mxu0 %v1828_v0  ;;  %1761 = vmatprep.subr.mxu1 %v1828_v0  ;;  %v364_v33 = vpop.f32.mrf.mxu1 }
 0x12f   :  { %1616 = vmatpush2.msra.mxu0 %v1499_v28  ;;  %1785 = vmatpush2.msra.mxu1 %v1499_v28  ;;  %v252_v40 = vpop.f32.mrf.mxu0 }
 0x130   :  { %1617 = vmatprep.subr.mxu0 %v1828_v0  ;;  %1762 = vmatprep.subr.mxu1 %v1828_v0 }
 0x131   :  { %1618 = vmatpush2.msra.mxu0 %v1498_v48  ;;  %1786 = vmatpush2.msra.mxu1 %v1498_v48  ;;  %v254_v39 = vpop.f32.mrf.mxu0 }
 0x132   :  { %1619 = vmatprep.subr.mxu0 %v1828_v0  ;;  %1763 = vmatprep.subr.mxu1 %v1828_v0  ;;  %v367_v15 = vpop.f32.mrf.mxu1 }
 0x133   :  { %1620 = vmatpush2.msra.mxu0 %v1497_v35  ;;  %1787 = vmatpush2.msra.mxu1 %v1497_v35  ;;  %v2639_v9 = vadd.f32 %v367_v15, %v252_v40 }
 0x134   :  { %1621 = vmatprep.subr.mxu0 %v1828_v0  ;;  %1764 = vmatprep.subr.mxu1 %v1828_v0  ;;  %v369_v58 = vpop.f32.mrf.mxu1  ;;  %v1520_v0 = vrot.slane %v2474_v54, 2  ;;  %v1531_v54 = vsel %vm409_vm2, %v2371_v23, %v1530_v57  ;;  %v1535_v23 = vsel %vm409_vm2, %v1530_v57, %v1534_v62 }
 0x135   :  { %1622 = vmatpush2.msra.mxu0 %v1496_v24  ;;  %1788 = vmatpush2.msra.mxu1 %v1496_v24  ;;  %v257_v53 = vpop.f32.mrf.mxu0 }
 0x136   :  { %1734 = vmatprep.mubr.msk.f32.mxu0 %vm146_vm1, %v1513_v44  ;;  %1738 = vmatprep.mubr.msk.f32.mxu1 %vm146_vm1, %v1529_v59  ;;  %v1521_v63 = vsel %vm409_vm2, %v1516_v1, %v1520_v0  ;;  %v1525_v29 = vsel %vm409_vm2, %v1520_v0, %v1524_v21 }
 0x137   :  { %1624 = vmatmul.mubr.f32.vlgmr.msra.gmra.mxu0 %v1510_v38  ;;  %1644 = vmatmul.mubr.f32.vlgmr.msra.gmra.mxu1 %v1527_v56  ;;  %v259_v42 = vpop.f32.mrf.mxu0 }
 0x138   :  { %1735 = vmatprep.mubr.msk.f32.mxu0 %vm146_vm1, %v1517_v4  ;;  %1739 = vmatprep.mubr.msk.f32.mxu1 %vm146_vm1, %v1533_v6  ;;  %v372_v60 = vpop.f32.mrf.mxu1 }
 0x139   :  { %v373_v14 = vadd.f32 %v372_v60, %v257_v53 }
 0x13a   :  { %v374_v2 = vpop.f32.mrf.mxu1 }
 0x13b   :  { %1629 = vmatmul.mubr.f32.gmra.mxu0 %v1515_v17  ;;  %1649 = vmatmul.mubr.f32.gmra.mxu1 %v1531_v54 }
 0x13c   :  { %1736 = vmatprep.mubr.msk.f32.mxu0 %vm146_vm1, %v1521_v63  ;;  %1740 = vmatprep.mubr.msk.f32.mxu1 %vm146_vm1, %v1537_v61  ;;  %v527_v5 = vpop.f32.mrf.mxu0 }
 0x13d   :  { %v561_v7 = vadd.f32 %v527_v5, %v2496_v20 }
 0x13e   :  { %v529_v8 = vpop.f32.mrf.mxu0  ;;  %v664_v10 = vpop.f32.mrf.mxu1 }
 0x13f   :  { %1634 = vmatmul.mubr.f32.gmra.mxu0 %v1519_v19  ;;  %1654 = vmatmul.mubr.f32.gmra.mxu1 %v1535_v23  ;;  %v698_v11 = vadd.f32 %v664_v10, %v561_v7 }
 0x140   :  { %1737 = vmatprep.mubr.msk.f32.mxu0 %vm146_vm1, %v1525_v29  ;;  %v666_v16 = vpop.f32.mrf.mxu1 }
 0x142   :  { %v532_v34 = vpop.f32.mrf.mxu0 }
 0x143   :  { %1639 = vmatmul.mubr.f32.gmra.mxu0 %v1523_v12  ;;  %v562_v36 = vadd.f32 %v532_v34, %v2588_v45 }
 0x144   :  { %v534_v25 = vpop.f32.mrf.mxu0 }
 0x146   :  { %v669_v27 = vpop.f32.mrf.mxu1 }
 0x147   :  { %v699_v28 = vadd.f32 %v669_v27, %v562_v36 }
 0x148   :  { %v537_v20 = vpop.f32.mrf.mxu0  ;;  %v671_v46 = vpop.f32.mrf.mxu1 }
 0x149   :  { %v563_v30 = vadd.f32 %v537_v20, %v2597_v3 }
 0x14a   :  { %v539_v31 = vpop.f32.mrf.mxu0 }
 0x14c   :  { %v674_v48 = vpop.f32.mrf.mxu1 }
 0x14d   :  { %v700_v33 = vadd.f32 %v674_v48, %v563_v30 }
 0x14e   :  { %v542_v18 = vpop.f32.mrf.mxu0  ;;  %v676_v41 = vpop.f32.mrf.mxu1 }
 0x14f   :  { %v564_v22 = vadd.f32 %v542_v18, %v2605_v13 }
 0x150   :  { %v544_v21 = vpop.f32.mrf.mxu0 }
 0x152   :  { %v679_v40 = vpop.f32.mrf.mxu1 }
 0x153   :  { %v701_v50 = vadd.f32 %v679_v40, %v564_v22 }
 0x154   :  { %v547_v35 = vpop.f32.mrf.mxu0  ;;  %v681_v37 = vpop.f32.mrf.mxu1 }
 0x155   :  { %v565_v45 = vadd.f32 %v547_v35, %v2619_v32 }
 0x156   :  { %v549_v55 = vpop.f32.mrf.mxu0 }
 0x158   :  { %v684_v1 = vpop.f32.mrf.mxu1 }
 0x159   :  { %v702_v47 = vadd.f32 %v684_v1, %v565_v45 }
 0x15a   :  { %v552_v39 = vpop.f32.mrf.mxu0  ;;  %v686_v24 = vpop.f32.mrf.mxu1 }
 0x15b   :  { %v566_v3 = vadd.f32 %v552_v39, %v2639_v9 }
 0x15c   :  { %v554_v49 = vpop.f32.mrf.mxu0 }
 0x15e   :  { %v689_v15 = vpop.f32.mrf.mxu1 }
 0x15f   :  { %v703_v44 = vadd.f32 %v689_v15, %v566_v3 }
 0x160   :  { %v557_v59 = vpop.f32.mrf.mxu0  ;;  %v691_v38 = vpop.f32.mrf.mxu1 }
 0x161   :  { %v567_v13 = vadd.f32 %v557_v59, %v373_v14 }
 0x162   :  { %v559_v56 = vpop.f32.mrf.mxu0 }
 0x164   :  { %v694_v51 = vpop.f32.mrf.mxu1 }
 0x165   :  { %v704_v57 = vadd.f32 %v694_v51, %v567_v13 }
 0x166   :  { %v696_v58 = vpop.f32.mrf.mxu1 }
 0x17a   :  { %v879_v4 = vpop.f32.mrf.mxu0 }
 0x17b   :  { %v913_v6 = vadd.f32 %v879_v4, %v698_v11 }
 0x17c   :  { %v881_v32 = vpop.f32.mrf.mxu0  ;;  %v1070_v0 = vpop.f32.mrf.mxu1 }
 0x17d   :  { %v2682_v26 = vadd.f32 %v1070_v0, %v913_v6 }
 0x17e   :  { %v1072_v52 = vpop.f32.mrf.mxu1 }
 0x180   :  { %v884_v53 = vpop.f32.mrf.mxu0 }
 0x181   :  { %v914_v42 = vadd.f32 %v884_v53, %v699_v28 }
 0x182   :  { %v886_v9 = vpop.f32.mrf.mxu0 }
 0x184   :  { %v1075_v17 = vpop.f32.mrf.mxu1 }
 0x185   :  { %v2684_v54 = vadd.f32 %v1075_v17, %v914_v42 }
 0x186   :  { %v889_v43 = vpop.f32.mrf.mxu0  ;;  %v1077_v62 = vpop.f32.mrf.mxu1 }
 0x187   :  { %v915_v60 = vadd.f32 %v889_v43, %v700_v33 }
 0x188   :  { %v891_v63 = vpop.f32.mrf.mxu0 }
 0x18a   :  { %v1080_v61 = vpop.f32.mrf.mxu1 }
 0x18b   :  { %v2686_v14 = vadd.f32 %v1080_v61, %v915_v60 }
 0x18c   :  { %v894_v2 = vpop.f32.mrf.mxu0  ;;  %v1082_v19 = vpop.f32.mrf.mxu1 }
 0x18d   :  { %v916_v23 = vadd.f32 %v894_v2, %v701_v50 }
 0x18e   :  { %v896_v5 = vpop.f32.mrf.mxu0 }
 0x190   :  { %v1085_v29 = vpop.f32.mrf.mxu1 }
 0x191   :  { %v2688_v7 = vadd.f32 %v1085_v29, %v916_v23 }
 0x192   :  { %v899_v8 = vpop.f32.mrf.mxu0  ;;  %v1087_v10 = vpop.f32.mrf.mxu1 }
 0x193   :  { %v917_v11 = vadd.f32 %v899_v8, %v702_v47 }
 0x194   :  { %v901_v12 = vpop.f32.mrf.mxu0 }
 0x196   :  { %v1090_v16 = vpop.f32.mrf.mxu1 }
 0x197   :  { %v1108_v34 = vadd.f32 %v1090_v16, %v917_v11 }
 0x198   :  { %v904_v36 = vpop.f32.mrf.mxu0  ;;  %v1092_v25 = vpop.f32.mrf.mxu1 }
 0x199   :  { %v918_v27 = vadd.f32 %v904_v36, %v703_v44 }
 0x19a   :  { %v906_v28 = vpop.f32.mrf.mxu0 }
 0x19c   :  { %v1095_v20 = vpop.f32.mrf.mxu1 }
 0x19d   :  { %v1109_v46 = vadd.f32 %v1095_v20, %v918_v27 }
 0x19e   :  { %v909_v30 = vpop.f32.mrf.mxu0  ;;  %v1097_v31 = vpop.f32.mrf.mxu1 }
 0x19f   :  { %v919_v48 = vadd.f32 %v909_v30, %v704_v57 }
 0x1a0   :  { %v911_v33 = vpop.f32.mrf.mxu0 }
 0x1a2   :  { %v1100_v18 = vpop.f32.mrf.mxu1 }
 0x1a3   :  { %v1110_v41 = vadd.f32 %v1100_v18, %v919_v48 }
 0x1a4   :  { %v1102_v22 = vpop.f32.mrf.mxu1 }
 0x1b8   :  { %v1219_v21 = vpop.f32.mrf.mxu0 }
 0x1b9   :  { %v1253_v42 = vadd.f32 %v1219_v21, %v2682_v26 }
 0x1ba   :  { %v1221_v40 = vpop.f32.mrf.mxu0  ;;  %v1434_v50 = vpop.f32.mrf.mxu1 }
 0x1bb   :  { %v1468_v17 = vadd.f32 %v1434_v50, %v1253_v42 }
 0x1bc   :  { %v1436_v35 = vpop.f32.mrf.mxu1 }
 0x1be   :  { %v1224_v37 = vpop.f32.mrf.mxu0 }
 0x1bf   :  { %v1254_v43 = vadd.f32 %v1224_v37, %v2684_v54 }
 0x1c0   :  { %v1226_v45 = vpop.f32.mrf.mxu0 }
 0x1c2   :  { %v1439_v55 = vpop.f32.mrf.mxu1 }
 0x1c3   :  { %v1469_v29 = vadd.f32 %v1439_v55, %v1254_v43 }
 0x1c4   :  { %v1229_v1 = vpop.f32.mrf.mxu0  ;;  %v1441_v47 = vpop.f32.mrf.mxu1 }
 0x1c5   :  { %v1255_v8 = vadd.f32 %v1229_v1, %v2686_v14 }
 0x1c6   :  { %v1231_v39 = vpop.f32.mrf.mxu0 }
 0x1c8   :  { %v1444_v24 = vpop.f32.mrf.mxu1 }
 0x1c9   :  { %v1470_v25 = vadd.f32 %v1444_v24, %v1255_v8 }
 0x1ca   :  { %v1234_v3 = vpop.f32.mrf.mxu0  ;;  %v1446_v49 = vpop.f32.mrf.mxu1 }
 0x1cb   :  { %v1256_v27 = vadd.f32 %v1234_v3, %v2688_v7 }
 0x1cc   :  { %v1236_v15 = vpop.f32.mrf.mxu0 }
 0x1ce   :  { %v1449_v44 = vpop.f32.mrf.mxu1 }
 0x1cf   :  { %v1471_v33 = vadd.f32 %v1449_v44, %v1256_v27 }
 0x1d0   :  { %v1239_v59 = vpop.f32.mrf.mxu0  ;;  %v1451_v38 = vpop.f32.mrf.mxu1 }
 0x1d1   :  { %v1257_v9 = vadd.f32 %v1239_v59, %v1108_v34 }
 0x1d2   :  { %v1241_v13 = vpop.f32.mrf.mxu0 }
 0x1d4   :  { %v1454_v56 = vpop.f32.mrf.mxu1 }
 0x1d5   :  { %v1472_v62 = vadd.f32 %v1454_v56, %v1257_v9 }
 0x1d6   :  { %v1244_v51 = vpop.f32.mrf.mxu0  ;;  %v1456_v57 = vpop.f32.mrf.mxu1 }
 0x1d7   :  { %v1258_v60 = vadd.f32 %v1244_v51, %v1109_v46 }
 0x1d8   :  { %v1246_v58 = vpop.f32.mrf.mxu0 }
 0x1da   :  { %v1459_v4 = vpop.f32.mrf.mxu1 }
 0x1db   :  { %v1473_v10 = vadd.f32 %v1459_v4, %v1258_v60 }
 0x1dc   :  { %v1249_v6 = vpop.f32.mrf.mxu0  ;;  %v1461_v32 = vpop.f32.mrf.mxu1 }
 0x1dd   :  { %v1259_v11 = vadd.f32 %v1249_v6, %v1110_v41 }
 0x1de   :  { %v1251_v0 = vpop.f32.mrf.mxu0 }
 0x1e0   :  { %v1464_v52 = vpop.f32.mrf.mxu1 }
 0x1e1   :  { %v1474_v14 = vadd.f32 %v1464_v52, %v1259_v11 }
 0x1e2   :  { %v1466_v53 = vpop.f32.mrf.mxu1 }
 0x1f7   :  { %v1625_v63 = vpop.f32.mrf.mxu0  ;;  %v1645_v61 = vpop.f32.mrf.mxu1 }
 0x1f8   :  { %v1659_v2 = vadd.f32 %v1625_v63, %v1468_v17  ;;  %v1663_v19 = vadd.f32 %v1645_v61, %v1472_v62 }
 0x1f9   :  { %v1627_v23 = vpop.f32.mrf.mxu0  ;;  %v1647_v5 = vpop.f32.mrf.mxu1 }
 0x1fa   :  { %1666 = vst [vmem:[%s2717_s2] sm:$0xff] %v1659_v2  ;;  %1670 = vst [vmem:[%s2717_s2 + $0x20] sm:$0xff] %v1663_v19 }
 0x1fb   :  { %v1630_v26 = vpop.f32.mrf.mxu0  ;;  %v1650_v54 = vpop.f32.mrf.mxu1 }
 0x1fc   :  { %v1660_v12 = vadd.f32 %v1630_v26, %v1469_v29  ;;  %v1664_v16 = vadd.f32 %v1650_v54, %v1473_v10 }
 0x1fd   :  { %v1632_v34 = vpop.f32.mrf.mxu0  ;;  %v1652_v36 = vpop.f32.mrf.mxu1 }
 0x1fe   :  { %1667 = vst [vmem:[%s2717_s2 + $0x8] sm:$0xff] %v1660_v12  ;;  %1671 = vst [vmem:[%s2717_s2 + $0x28] sm:$0xff] %v1664_v16 }
 0x1ff   :  { %v1635_v28 = vpop.f32.mrf.mxu0  ;;  %v1655_v20 = vpop.f32.mrf.mxu1 }
 0x200   :  { %v1661_v46 = vadd.f32 %v1635_v28, %v1470_v25  ;;  %v1665_v30 = vadd.f32 %v1655_v20, %v1474_v14 }
 0x201   :  { %v1637_v31 = vpop.f32.mrf.mxu0  ;;  %v1657_v48 = vpop.f32.mrf.mxu1 }
 0x202   :  { %1668 = vst [vmem:[%s2717_s2 + $0x10] sm:$0xff] %v1661_v46  ;;  %1672 = vst [vmem:[%s2717_s2 + $0x30] sm:$0xff] %v1665_v30 }
 0x203   :  { %v1640_v7 = vpop.f32.mrf.mxu0 }
 0x204   :  { %v1662_v18 = vadd.f32 %v1640_v7, %v1471_v33 }
 0x205   :  { %v1642_v41 = vpop.f32.mrf.mxu0 }
 0x206   :  { %1669 = vst [vmem:[%s2717_s2 + $0x18] sm:$0xff] %v1662_v18 }
 0x207   :  { %1677 = vsyncpa [#allocation3], 1 }

</bundles_post_ra>
